<compile_context>
chip_gen: v6e
topology: v6e:2x2x1
jax: 0.10.0
libtpu: 0.0.40
codegen_flags: <defaults>
</compile_context>

<pallas_src>
import functools

import jax
import jax.numpy as jnp
import numpy as np
from jax.experimental import pallas as pl
from jax.experimental.pallas import tpu as pltpu

LEAKINESS = 0.01
EPS = 1e-5


def resnet_kernel(x_ref, w_ref, p_ref, o_ref, *, Hp, Wp, inv_hw, tap_shifts):
    # x_ref: (1, C, Sp_pad)  one sample, flattened zero-padded spatial (lane-dense)
    # w_ref: (9*C, C, 1)     w_ref[k*C + ci] = weight column w[:, ci, kh, kw]
    # p_ref: (3, C, 1)       rows: conv bias, inst-norm gamma, inst-norm beta
    # o_ref: (1, C, Sp_pad)
    x = x_ref[0]                                    # (C, Sp_pad) f32, halo == 0
    C = x.shape[0]
    bias = p_ref[0]                                 # (C, 1)
    gamma = p_ref[1]                                # (C, 1)
    beta = p_ref[2]                                 # (C, 1)

    # Validity mask (1.0 at the H*W interior positions, 0.0 at halo / lane
    # tail), regenerated from iota — zero HBM traffic.  Float div keeps the
    # lowering trivial; the +0.5 makes floor() robust to 1/Wp rounding error.
    pos = jax.lax.broadcasted_iota(jnp.int32, x.shape, 1).astype(jnp.float32)
    row = jnp.floor((pos + 0.5) * (1.0 / Wp))
    col = pos - row * Wp
    mask = ((row >= 1.0) & (row <= float(Hp - 2)) &
            (col >= 1.0) & (col <= float(Wp - 2))).astype(jnp.float32)
    beta_m = beta * mask                            # keeps halo exactly 0

    # Hoist the 9*C tiny weight columns once; shared by both convs.
    w_cols = [w_ref[i] for i in range(9 * C)]       # each (C, 1)

    def conv(inp):
        # 3x3 conv: each tap is a constant roll of the zero-padded flattened
        # image (XLU slot), channel mixing as broadcast FMAs on the VPU.
        # For large C, replace the inner ci-loop with jnp.dot(wk, rolled) (M=C).
        acc = None
        for k, s in enumerate(tap_shifts):
            r = inp if s == 0 else pltpu.roll(inp, shift=s, axis=1)
            for ci in range(C):
                term = w_cols[k * C + ci] * r[ci:ci + 1, :]   # (C,1)*(1,Sp)->(C,Sp)
                acc = term if acc is None else acc + term
        return acc + bias

    def inst_norm(y):
        # Stats over the H*W valid positions only (training-mode semantics).
        mean = jnp.sum(y * mask, axis=1, keepdims=True) * inv_hw     # (C, 1)
        diff = (y - mean) * mask
        var = jnp.sum(diff * diff, axis=1, keepdims=True) * inv_hw
        scale = jax.lax.rsqrt(var + EPS) * gamma
        return diff * scale + beta_m                # stays exactly 0 in the halo

    def lrelu(y):
        return jnp.where(y >= 0, y, y * LEAKINESS)

    y = lrelu(inst_norm(conv(x)))                   # halo stays 0 (lrelu(0) == 0)
    y = inst_norm(conv(y))
    o_ref[0] = lrelu(y + x).astype(o_ref.dtype)     # residual; x halo is 0


@jax.jit
def resnet_module_forward(x_nchw, w_oihw, bias, gamma, beta):
    """Pallas implementation.  x_nchw: (B, C, H, W) float32 -> (B, C, H, W)."""
    B, C, H, W = x_nchw.shape
    Hp, Wp = H + 2, W + 2
    Sp = Hp * Wp
    Sp_pad = ((Sp + 127) // 128) * 128              # lane-dense (multiple of 128)

    # NOTE: one extra HBM pass each for the pad/flatten and the final slice —
    # acceptable here; fold into the kernel (interior DMA) at production sizes.
    x_flat = jnp.pad(x_nchw.astype(jnp.float32), ((0, 0), (0, 0), (1, 1), (1, 1)))
    x_flat = x_flat.reshape(B, C, Sp)
    x_flat = jnp.pad(x_flat, ((0, 0), (0, 0), (0, Sp_pad - Sp)))    # (B, C, Sp_pad)

    # Weight columns: w_kc[(kh*3+kw)*C + ci, co, 0] = w[co, ci, kh, kw].
    w_kc = jnp.transpose(w_oihw.astype(jnp.float32),
                         (2, 3, 1, 0)).reshape(9 * C, C)[:, :, None]
    # Packed per-channel scalars: [bias, gamma, beta].
    params = jnp.stack([bias, gamma, beta]).astype(jnp.float32)[:, :, None]   # (3, C, 1)

    # Constant flattened-space shift per tap (center tap = 0, no roll).
    tap_shifts = tuple(
        0 if (kh == 1 and kw == 1)
        else (-((kh - 1) * Wp + (kw - 1))) % Sp_pad
        for kh in range(3) for kw in range(3))

    kernel = functools.partial(resnet_kernel, Hp=Hp, Wp=Wp,
                               inv_hw=1.0 / (H * W), tap_shifts=tap_shifts)

    out_flat = pl.pallas_call(
        kernel,
        out_shape=jax.ShapeDtypeStruct((B, C, Sp_pad), jnp.float32),
        grid_spec=pltpu.PrefetchScalarGridSpec(
            num_scalar_prefetch=0,
            grid=(B,),                                             # real batch grid axis
            in_specs=[
                pl.BlockSpec((1, C, Sp_pad), lambda b: (b, 0, 0)),  # x (one sample)
                pl.BlockSpec((9 * C, C, 1), lambda b: (0, 0, 0)),   # weight columns
                pl.BlockSpec((3, C, 1), lambda b: (0, 0, 0)),       # bias/gamma/beta
            ],
            out_specs=pl.BlockSpec((1, C, Sp_pad), lambda b: (b, 0, 0)),
        ),
        compiler_params=pltpu.CompilerParams(
            dimension_semantics=("parallel",)),
        input_output_aliases={0: 0},                # reuse x's HBM buffer for the output
    )(x_flat, w_kc, params)

    # Drop lane tail and the 1-pixel halo.
    out = out_flat[:, :, :Sp].reshape(B, C, Hp, Wp)[:, :, 1:H + 1, 1:W + 1]
    return out


def reference_forward(x_nchw, w_oihw, bias, gamma, beta):
    """Pure-JAX reference mirroring the PyTorch module semantics."""
    def conv(t):
        y = jax.lax.conv_general_dilated(
            t, w_oihw, window_strides=(1, 1), padding=((1, 1), (1, 1)),
            dimension_numbers=("NCHW", "OIHW", "NCHW"),
            precision=jax.lax.Precision.HIGHEST)
        return y + bias[None, :, None, None]

    def inst_norm(t):
        mean = jnp.mean(t, axis=(2, 3), keepdims=True)
        var = jnp.mean(jnp.square(t - mean), axis=(2, 3), keepdims=True)
        return ((t - mean) * jax.lax.rsqrt(var + EPS)
                * gamma[None, :, None, None] + beta[None, :, None, None])

    def lrelu(t):
        return jnp.where(t >= 0, t, LEAKINESS * t)

    skip = x_nchw
    y = lrelu(inst_norm(conv(x_nchw)))
    y = inst_norm(conv(y))
    y = y + skip
    return lrelu(y)


if __name__ == "__main__":
    B, C, H, W = 2, 4, 16, 16          # output_channels == input channels == 4

    key = jax.random.PRNGKey(0)
    kx, kw, kb, kg, kbt = jax.random.split(key, 5)

    x = jax.random.normal(kx, (B, C, H, W), dtype=jnp.float32)
    # Conv(output_channels, output_channels, kernel_size=3, padding=1, bias=True)
    w = jax.random.normal(kw, (C, C, 3, 3), dtype=jnp.float32) * 0.2
    b = jax.random.normal(kb, (C,), dtype=jnp.float32) * 0.1
    # InstanceNorm(output_channels, affine=True) — randomized affine params
    gamma = 1.0 + 0.1 * jax.random.normal(kg, (C,), dtype=jnp.float32)
    beta = 0.1 * jax.random.normal(kbt, (C,), dtype=jnp.float32)

    out = jax.block_until_ready(resnet_module_forward(x, w, b, gamma, beta))
    ref = jax.block_until_ready(reference_forward(x, w, b, gamma, beta))
    np.testing.assert_allclose(np.asarray(out), np.asarray(ref),
                               rtol=1e-4, atol=1e-4)
    print("KERNEL_OK")
</pallas_src>

<mosaic_0001>
module attributes {stable_mosaic.version = 11 : i64} {
  func.func @resnet_kernel(%arg0: i32, %arg1: memref<1x4x384xf32, #tpu.memory_space<vmem>>, %arg2: memref<36x4x1xf32, #tpu.memory_space<vmem>>, %arg3: memref<3x4x1xf32, #tpu.memory_space<vmem>>, %arg4: memref<1x4x384xf32, #tpu.memory_space<vmem>>) attributes {dimension_semantics = [#tpu.dimension_semantics<parallel>], iteration_bounds = array<i64: 2>, scalar_prefetch = 0 : i64, scratch_operands = 0 : i64, tpu.core_type = #tpu.core_type<tc>, window_params = [{transform_indices = @transform_0, window_bounds = array<i64: 1, 4, 384>}, {pipeline_mode = #tpu.pipeline_mode<synchronous>, transform_indices = @transform_1, window_bounds = array<i64: 36, 4, 1>}, {pipeline_mode = #tpu.pipeline_mode<synchronous>, transform_indices = @transform_2, window_bounds = array<i64: 3, 4, 1>}, {transform_indices = @transform_3, window_bounds = array<i64: 1, 4, 384>}]} {
    %c0 = arith.constant 0 : index
    %c0_0 = arith.constant 0 : index
    %c0_1 = arith.constant 0 : index
    %0 = vector.load %arg1[%c0, %c0_0, %c0_1] : memref<1x4x384xf32, #tpu.memory_space<vmem>>, vector<1x4x384xf32>
    %1 = vector.shape_cast %0 : vector<1x4x384xf32> to vector<4x384xf32>
    %c0_2 = arith.constant 0 : index
    %c0_3 = arith.constant 0 : index
    %c0_4 = arith.constant 0 : index
    %2 = vector.load %arg3[%c0_2, %c0_3, %c0_4] : memref<3x4x1xf32, #tpu.memory_space<vmem>>, vector<1x4x1xf32>
    %3 = vector.shape_cast %2 : vector<1x4x1xf32> to vector<4x1xf32>
    %c1 = arith.constant 1 : index
    %c0_5 = arith.constant 0 : index
    %c0_6 = arith.constant 0 : index
    %4 = vector.load %arg3[%c1, %c0_5, %c0_6] : memref<3x4x1xf32, #tpu.memory_space<vmem>>, vector<1x4x1xf32>
    %5 = vector.shape_cast %4 : vector<1x4x1xf32> to vector<4x1xf32>
    %c2 = arith.constant 2 : index
    %c0_7 = arith.constant 0 : index
    %c0_8 = arith.constant 0 : index
    %6 = vector.load %arg3[%c2, %c0_7, %c0_8] : memref<3x4x1xf32, #tpu.memory_space<vmem>>, vector<1x4x1xf32>
    %7 = vector.shape_cast %6 : vector<1x4x1xf32> to vector<4x1xf32>
    %8 = tpu.iota {dimensions = array<i32: 1>} : vector<4x384xi32>
    %9 = arith.sitofp %8 : vector<4x384xi32> to vector<4x384xf32>
    %cst = arith.constant 5.000000e-01 : f32
    %10 = vector.broadcast %cst : f32 to vector<4x384xf32>
    %11 = arith.addf %9, %10 : vector<4x384xf32>
    %cst_9 = arith.constant 0.055555556 : f32
    %12 = vector.broadcast %cst_9 : f32 to vector<4x384xf32>
    %13 = arith.mulf %11, %12 : vector<4x384xf32>
    %14 = math.floor %13 : vector<4x384xf32>
    %cst_10 = arith.constant 1.800000e+01 : f32
    %15 = vector.broadcast %cst_10 : f32 to vector<4x384xf32>
    %16 = arith.mulf %14, %15 : vector<4x384xf32>
    %17 = arith.subf %9, %16 : vector<4x384xf32>
    %cst_11 = arith.constant 1.000000e+00 : f32
    %18 = vector.broadcast %cst_11 : f32 to vector<4x384xf32>
    %19 = arith.cmpf oge, %14, %18 : vector<4x384xf32>
    %cst_12 = arith.constant 1.600000e+01 : f32
    %20 = vector.broadcast %cst_12 : f32 to vector<4x384xf32>
    %21 = arith.cmpf ole, %14, %20 : vector<4x384xf32>
    %22 = arith.andi %19, %21 : vector<4x384xi1>
    %cst_13 = arith.constant 1.000000e+00 : f32
    %23 = vector.broadcast %cst_13 : f32 to vector<4x384xf32>
    %24 = arith.cmpf oge, %17, %23 : vector<4x384xf32>
    %25 = arith.andi %22, %24 : vector<4x384xi1>
    %cst_14 = arith.constant 1.600000e+01 : f32
    %26 = vector.broadcast %cst_14 : f32 to vector<4x384xf32>
    %27 = arith.cmpf ole, %17, %26 : vector<4x384xf32>
    %28 = arith.andi %25, %27 : vector<4x384xi1>
    %29 = arith.extui %28 : vector<4x384xi1> to vector<4x384xi32>
    %30 = arith.sitofp %29 : vector<4x384xi32> to vector<4x384xf32>
    %31 = vector.broadcast %7 : vector<4x1xf32> to vector<4x384xf32>
    %32 = arith.mulf %31, %30 : vector<4x384xf32>
    %c0_15 = arith.constant 0 : index
    %c0_16 = arith.constant 0 : index
    %c0_17 = arith.constant 0 : index
    %33 = vector.load %arg2[%c0_15, %c0_16, %c0_17] : memref<36x4x1xf32, #tpu.memory_space<vmem>>, vector<1x4x1xf32>
    %34 = vector.shape_cast %33 : vector<1x4x1xf32> to vector<4x1xf32>
    %c1_18 = arith.constant 1 : index
    %c0_19 = arith.constant 0 : index
    %c0_20 = arith.constant 0 : index
    %35 = vector.load %arg2[%c1_18, %c0_19, %c0_20] : memref<36x4x1xf32, #tpu.memory_space<vmem>>, vector<1x4x1xf32>
    %36 = vector.shape_cast %35 : vector<1x4x1xf32> to vector<4x1xf32>
    %c2_21 = arith.constant 2 : index
    %c0_22 = arith.constant 0 : index
    %c0_23 = arith.constant 0 : index
    %37 = vector.load %arg2[%c2_21, %c0_22, %c0_23] : memref<36x4x1xf32, #tpu.memory_space<vmem>>, vector<1x4x1xf32>
    %38 = vector.shape_cast %37 : vector<1x4x1xf32> to vector<4x1xf32>
    %c3 = arith.constant 3 : index
    %c0_24 = arith.constant 0 : index
    %c0_25 = arith.constant 0 : index
    %39 = vector.load %arg2[%c3, %c0_24, %c0_25] : memref<36x4x1xf32, #tpu.memory_space<vmem>>, vector<1x4x1xf32>
    %40 = vector.shape_cast %39 : vector<1x4x1xf32> to vector<4x1xf32>
    %c4 = arith.constant 4 : index
    %c0_26 = arith.constant 0 : index
    %c0_27 = arith.constant 0 : index
    %41 = vector.load %arg2[%c4, %c0_26, %c0_27] : memref<36x4x1xf32, #tpu.memory_space<vmem>>, vector<1x4x1xf32>
    %42 = vector.shape_cast %41 : vector<1x4x1xf32> to vector<4x1xf32>
    %c5 = arith.constant 5 : index
    %c0_28 = arith.constant 0 : index
    %c0_29 = arith.constant 0 : index
    %43 = vector.load %arg2[%c5, %c0_28, %c0_29] : memref<36x4x1xf32, #tpu.memory_space<vmem>>, vector<1x4x1xf32>
    %44 = vector.shape_cast %43 : vector<1x4x1xf32> to vector<4x1xf32>
    %c6 = arith.constant 6 : index
    %c0_30 = arith.constant 0 : index
    %c0_31 = arith.constant 0 : index
    %45 = vector.load %arg2[%c6, %c0_30, %c0_31] : memref<36x4x1xf32, #tpu.memory_space<vmem>>, vector<1x4x1xf32>
    %46 = vector.shape_cast %45 : vector<1x4x1xf32> to vector<4x1xf32>
    %c7 = arith.constant 7 : index
    %c0_32 = arith.constant 0 : index
    %c0_33 = arith.constant 0 : index
    %47 = vector.load %arg2[%c7, %c0_32, %c0_33] : memref<36x4x1xf32, #tpu.memory_space<vmem>>, vector<1x4x1xf32>
    %48 = vector.shape_cast %47 : vector<1x4x1xf32> to vector<4x1xf32>
    %c8 = arith.constant 8 : index
    %c0_34 = arith.constant 0 : index
    %c0_35 = arith.constant 0 : index
    %49 = vector.load %arg2[%c8, %c0_34, %c0_35] : memref<36x4x1xf32, #tpu.memory_space<vmem>>, vector<1x4x1xf32>
    %50 = vector.shape_cast %49 : vector<1x4x1xf32> to vector<4x1xf32>
    %c9 = arith.constant 9 : index
    %c0_36 = arith.constant 0 : index
    %c0_37 = arith.constant 0 : index
    %51 = vector.load %arg2[%c9, %c0_36, %c0_37] : memref<36x4x1xf32, #tpu.memory_space<vmem>>, vector<1x4x1xf32>
    %52 = vector.shape_cast %51 : vector<1x4x1xf32> to vector<4x1xf32>
    %c10 = arith.constant 10 : index
    %c0_38 = arith.constant 0 : index
    %c0_39 = arith.constant 0 : index
    %53 = vector.load %arg2[%c10, %c0_38, %c0_39] : memref<36x4x1xf32, #tpu.memory_space<vmem>>, vector<1x4x1xf32>
    %54 = vector.shape_cast %53 : vector<1x4x1xf32> to vector<4x1xf32>
    %c11 = arith.constant 11 : index
    %c0_40 = arith.constant 0 : index
    %c0_41 = arith.constant 0 : index
    %55 = vector.load %arg2[%c11, %c0_40, %c0_41] : memref<36x4x1xf32, #tpu.memory_space<vmem>>, vector<1x4x1xf32>
    %56 = vector.shape_cast %55 : vector<1x4x1xf32> to vector<4x1xf32>
    %c12 = arith.constant 12 : index
    %c0_42 = arith.constant 0 : index
    %c0_43 = arith.constant 0 : index
    %57 = vector.load %arg2[%c12, %c0_42, %c0_43] : memref<36x4x1xf32, #tpu.memory_space<vmem>>, vector<1x4x1xf32>
    %58 = vector.shape_cast %57 : vector<1x4x1xf32> to vector<4x1xf32>
    %c13 = arith.constant 13 : index
    %c0_44 = arith.constant 0 : index
    %c0_45 = arith.constant 0 : index
    %59 = vector.load %arg2[%c13, %c0_44, %c0_45] : memref<36x4x1xf32, #tpu.memory_space<vmem>>, vector<1x4x1xf32>
    %60 = vector.shape_cast %59 : vector<1x4x1xf32> to vector<4x1xf32>
    %c14 = arith.constant 14 : index
    %c0_46 = arith.constant 0 : index
    %c0_47 = arith.constant 0 : index
    %61 = vector.load %arg2[%c14, %c0_46, %c0_47] : memref<36x4x1xf32, #tpu.memory_space<vmem>>, vector<1x4x1xf32>
    %62 = vector.shape_cast %61 : vector<1x4x1xf32> to vector<4x1xf32>
    %c15 = arith.constant 15 : index
    %c0_48 = arith.constant 0 : index
    %c0_49 = arith.constant 0 : index
    %63 = vector.load %arg2[%c15, %c0_48, %c0_49] : memref<36x4x1xf32, #tpu.memory_space<vmem>>, vector<1x4x1xf32>
    %64 = vector.shape_cast %63 : vector<1x4x1xf32> to vector<4x1xf32>
    %c16 = arith.constant 16 : index
    %c0_50 = arith.constant 0 : index
    %c0_51 = arith.constant 0 : index
    %65 = vector.load %arg2[%c16, %c0_50, %c0_51] : memref<36x4x1xf32, #tpu.memory_space<vmem>>, vector<1x4x1xf32>
    %66 = vector.shape_cast %65 : vector<1x4x1xf32> to vector<4x1xf32>
    %c17 = arith.constant 17 : index
    %c0_52 = arith.constant 0 : index
    %c0_53 = arith.constant 0 : index
    %67 = vector.load %arg2[%c17, %c0_52, %c0_53] : memref<36x4x1xf32, #tpu.memory_space<vmem>>, vector<1x4x1xf32>
    %68 = vector.shape_cast %67 : vector<1x4x1xf32> to vector<4x1xf32>
    %c18 = arith.constant 18 : index
    %c0_54 = arith.constant 0 : index
    %c0_55 = arith.constant 0 : index
    %69 = vector.load %arg2[%c18, %c0_54, %c0_55] : memref<36x4x1xf32, #tpu.memory_space<vmem>>, vector<1x4x1xf32>
    %70 = vector.shape_cast %69 : vector<1x4x1xf32> to vector<4x1xf32>
    %c19 = arith.constant 19 : index
    %c0_56 = arith.constant 0 : index
    %c0_57 = arith.constant 0 : index
    %71 = vector.load %arg2[%c19, %c0_56, %c0_57] : memref<36x4x1xf32, #tpu.memory_space<vmem>>, vector<1x4x1xf32>
    %72 = vector.shape_cast %71 : vector<1x4x1xf32> to vector<4x1xf32>
    %c20 = arith.constant 20 : index
    %c0_58 = arith.constant 0 : index
    %c0_59 = arith.constant 0 : index
    %73 = vector.load %arg2[%c20, %c0_58, %c0_59] : memref<36x4x1xf32, #tpu.memory_space<vmem>>, vector<1x4x1xf32>
    %74 = vector.shape_cast %73 : vector<1x4x1xf32> to vector<4x1xf32>
    %c21 = arith.constant 21 : index
    %c0_60 = arith.constant 0 : index
    %c0_61 = arith.constant 0 : index
    %75 = vector.load %arg2[%c21, %c0_60, %c0_61] : memref<36x4x1xf32, #tpu.memory_space<vmem>>, vector<1x4x1xf32>
    %76 = vector.shape_cast %75 : vector<1x4x1xf32> to vector<4x1xf32>
    %c22 = arith.constant 22 : index
    %c0_62 = arith.constant 0 : index
    %c0_63 = arith.constant 0 : index
    %77 = vector.load %arg2[%c22, %c0_62, %c0_63] : memref<36x4x1xf32, #tpu.memory_space<vmem>>, vector<1x4x1xf32>
    %78 = vector.shape_cast %77 : vector<1x4x1xf32> to vector<4x1xf32>
    %c23 = arith.constant 23 : index
    %c0_64 = arith.constant 0 : index
    %c0_65 = arith.constant 0 : index
    %79 = vector.load %arg2[%c23, %c0_64, %c0_65] : memref<36x4x1xf32, #tpu.memory_space<vmem>>, vector<1x4x1xf32>
    %80 = vector.shape_cast %79 : vector<1x4x1xf32> to vector<4x1xf32>
    %c24 = arith.constant 24 : index
    %c0_66 = arith.constant 0 : index
    %c0_67 = arith.constant 0 : index
    %81 = vector.load %arg2[%c24, %c0_66, %c0_67] : memref<36x4x1xf32, #tpu.memory_space<vmem>>, vector<1x4x1xf32>
    %82 = vector.shape_cast %81 : vector<1x4x1xf32> to vector<4x1xf32>
    %c25 = arith.constant 25 : index
    %c0_68 = arith.constant 0 : index
    %c0_69 = arith.constant 0 : index
    %83 = vector.load %arg2[%c25, %c0_68, %c0_69] : memref<36x4x1xf32, #tpu.memory_space<vmem>>, vector<1x4x1xf32>
    %84 = vector.shape_cast %83 : vector<1x4x1xf32> to vector<4x1xf32>
    %c26 = arith.constant 26 : index
    %c0_70 = arith.constant 0 : index
    %c0_71 = arith.constant 0 : index
    %85 = vector.load %arg2[%c26, %c0_70, %c0_71] : memref<36x4x1xf32, #tpu.memory_space<vmem>>, vector<1x4x1xf32>
    %86 = vector.shape_cast %85 : vector<1x4x1xf32> to vector<4x1xf32>
    %c27 = arith.constant 27 : index
    %c0_72 = arith.constant 0 : index
    %c0_73 = arith.constant 0 : index
    %87 = vector.load %arg2[%c27, %c0_72, %c0_73] : memref<36x4x1xf32, #tpu.memory_space<vmem>>, vector<1x4x1xf32>
    %88 = vector.shape_cast %87 : vector<1x4x1xf32> to vector<4x1xf32>
    %c28 = arith.constant 28 : index
    %c0_74 = arith.constant 0 : index
    %c0_75 = arith.constant 0 : index
    %89 = vector.load %arg2[%c28, %c0_74, %c0_75] : memref<36x4x1xf32, #tpu.memory_space<vmem>>, vector<1x4x1xf32>
    %90 = vector.shape_cast %89 : vector<1x4x1xf32> to vector<4x1xf32>
    %c29 = arith.constant 29 : index
    %c0_76 = arith.constant 0 : index
    %c0_77 = arith.constant 0 : index
    %91 = vector.load %arg2[%c29, %c0_76, %c0_77] : memref<36x4x1xf32, #tpu.memory_space<vmem>>, vector<1x4x1xf32>
    %92 = vector.shape_cast %91 : vector<1x4x1xf32> to vector<4x1xf32>
    %c30 = arith.constant 30 : index
    %c0_78 = arith.constant 0 : index
    %c0_79 = arith.constant 0 : index
    %93 = vector.load %arg2[%c30, %c0_78, %c0_79] : memref<36x4x1xf32, #tpu.memory_space<vmem>>, vector<1x4x1xf32>
    %94 = vector.shape_cast %93 : vector<1x4x1xf32> to vector<4x1xf32>
    %c31 = arith.constant 31 : index
    %c0_80 = arith.constant 0 : index
    %c0_81 = arith.constant 0 : index
    %95 = vector.load %arg2[%c31, %c0_80, %c0_81] : memref<36x4x1xf32, #tpu.memory_space<vmem>>, vector<1x4x1xf32>
    %96 = vector.shape_cast %95 : vector<1x4x1xf32> to vector<4x1xf32>
    %c32 = arith.constant 32 : index
    %c0_82 = arith.constant 0 : index
    %c0_83 = arith.constant 0 : index
    %97 = vector.load %arg2[%c32, %c0_82, %c0_83] : memref<36x4x1xf32, #tpu.memory_space<vmem>>, vector<1x4x1xf32>
    %98 = vector.shape_cast %97 : vector<1x4x1xf32> to vector<4x1xf32>
    %c33 = arith.constant 33 : index
    %c0_84 = arith.constant 0 : index
    %c0_85 = arith.constant 0 : index
    %99 = vector.load %arg2[%c33, %c0_84, %c0_85] : memref<36x4x1xf32, #tpu.memory_space<vmem>>, vector<1x4x1xf32>
    %100 = vector.shape_cast %99 : vector<1x4x1xf32> to vector<4x1xf32>
    %c34 = arith.constant 34 : index
    %c0_86 = arith.constant 0 : index
    %c0_87 = arith.constant 0 : index
    %101 = vector.load %arg2[%c34, %c0_86, %c0_87] : memref<36x4x1xf32, #tpu.memory_space<vmem>>, vector<1x4x1xf32>
    %102 = vector.shape_cast %101 : vector<1x4x1xf32> to vector<4x1xf32>
    %c35 = arith.constant 35 : index
    %c0_88 = arith.constant 0 : index
    %c0_89 = arith.constant 0 : index
    %103 = vector.load %arg2[%c35, %c0_88, %c0_89] : memref<36x4x1xf32, #tpu.memory_space<vmem>>, vector<1x4x1xf32>
    %104 = vector.shape_cast %103 : vector<1x4x1xf32> to vector<4x1xf32>
    %c19_i32 = arith.constant 19 : i32
    %105 = tpu.dynamic_rotate %1 by %c19_i32 dim 1 : vector<4x384xf32>, i32 -> vector<4x384xf32>
    %106 = vector.extract_strided_slice %105 {offsets = [0, 0], sizes = [1, 384], strides = [1, 1]} : vector<4x384xf32> to vector<1x384xf32>
    %107 = vector.broadcast %34 : vector<4x1xf32> to vector<4x384xf32>
    %108 = vector.broadcast %106 : vector<1x384xf32> to vector<4x384xf32>
    %109 = arith.mulf %107, %108 : vector<4x384xf32>
    %110 = vector.extract_strided_slice %105 {offsets = [1, 0], sizes = [1, 384], strides = [1, 1]} : vector<4x384xf32> to vector<1x384xf32>
    %111 = vector.broadcast %36 : vector<4x1xf32> to vector<4x384xf32>
    %112 = vector.broadcast %110 : vector<1x384xf32> to vector<4x384xf32>
    %113 = arith.mulf %111, %112 : vector<4x384xf32>
    %114 = arith.addf %109, %113 : vector<4x384xf32>
    %115 = vector.extract_strided_slice %105 {offsets = [2, 0], sizes = [1, 384], strides = [1, 1]} : vector<4x384xf32> to vector<1x384xf32>
    %116 = vector.broadcast %38 : vector<4x1xf32> to vector<4x384xf32>
    %117 = vector.broadcast %115 : vector<1x384xf32> to vector<4x384xf32>
    %118 = arith.mulf %116, %117 : vector<4x384xf32>
    %119 = arith.addf %114, %118 : vector<4x384xf32>
    %120 = vector.extract_strided_slice %105 {offsets = [3, 0], sizes = [1, 384], strides = [1, 1]} : vector<4x384xf32> to vector<1x384xf32>
    %121 = vector.broadcast %40 : vector<4x1xf32> to vector<4x384xf32>
    %122 = vector.broadcast %120 : vector<1x384xf32> to vector<4x384xf32>
    %123 = arith.mulf %121, %122 : vector<4x384xf32>
    %124 = arith.addf %119, %123 : vector<4x384xf32>
    %c18_i32 = arith.constant 18 : i32
    %125 = tpu.dynamic_rotate %1 by %c18_i32 dim 1 : vector<4x384xf32>, i32 -> vector<4x384xf32>
    %126 = vector.extract_strided_slice %125 {offsets = [0, 0], sizes = [1, 384], strides = [1, 1]} : vector<4x384xf32> to vector<1x384xf32>
    %127 = vector.broadcast %42 : vector<4x1xf32> to vector<4x384xf32>
    %128 = vector.broadcast %126 : vector<1x384xf32> to vector<4x384xf32>
    %129 = arith.mulf %127, %128 : vector<4x384xf32>
    %130 = arith.addf %124, %129 : vector<4x384xf32>
    %131 = vector.extract_strided_slice %125 {offsets = [1, 0], sizes = [1, 384], strides = [1, 1]} : vector<4x384xf32> to vector<1x384xf32>
    %132 = vector.broadcast %44 : vector<4x1xf32> to vector<4x384xf32>
    %133 = vector.broadcast %131 : vector<1x384xf32> to vector<4x384xf32>
    %134 = arith.mulf %132, %133 : vector<4x384xf32>
    %135 = arith.addf %130, %134 : vector<4x384xf32>
    %136 = vector.extract_strided_slice %125 {offsets = [2, 0], sizes = [1, 384], strides = [1, 1]} : vector<4x384xf32> to vector<1x384xf32>
    %137 = vector.broadcast %46 : vector<4x1xf32> to vector<4x384xf32>
    %138 = vector.broadcast %136 : vector<1x384xf32> to vector<4x384xf32>
    %139 = arith.mulf %137, %138 : vector<4x384xf32>
    %140 = arith.addf %135, %139 : vector<4x384xf32>
    %141 = vector.extract_strided_slice %125 {offsets = [3, 0], sizes = [1, 384], strides = [1, 1]} : vector<4x384xf32> to vector<1x384xf32>
    %142 = vector.broadcast %48 : vector<4x1xf32> to vector<4x384xf32>
    %143 = vector.broadcast %141 : vector<1x384xf32> to vector<4x384xf32>
    %144 = arith.mulf %142, %143 : vector<4x384xf32>
    %145 = arith.addf %140, %144 : vector<4x384xf32>
    %c17_i32 = arith.constant 17 : i32
    %146 = tpu.dynamic_rotate %1 by %c17_i32 dim 1 : vector<4x384xf32>, i32 -> vector<4x384xf32>
    %147 = vector.extract_strided_slice %146 {offsets = [0, 0], sizes = [1, 384], strides = [1, 1]} : vector<4x384xf32> to vector<1x384xf32>
    %148 = vector.broadcast %50 : vector<4x1xf32> to vector<4x384xf32>
    %149 = vector.broadcast %147 : vector<1x384xf32> to vector<4x384xf32>
    %150 = arith.mulf %148, %149 : vector<4x384xf32>
    %151 = arith.addf %145, %150 : vector<4x384xf32>
    %152 = vector.extract_strided_slice %146 {offsets = [1, 0], sizes = [1, 384], strides = [1, 1]} : vector<4x384xf32> to vector<1x384xf32>
    %153 = vector.broadcast %52 : vector<4x1xf32> to vector<4x384xf32>
    %154 = vector.broadcast %152 : vector<1x384xf32> to vector<4x384xf32>
    %155 = arith.mulf %153, %154 : vector<4x384xf32>
    %156 = arith.addf %151, %155 : vector<4x384xf32>
    %157 = vector.extract_strided_slice %146 {offsets = [2, 0], sizes = [1, 384], strides = [1, 1]} : vector<4x384xf32> to vector<1x384xf32>
    %158 = vector.broadcast %54 : vector<4x1xf32> to vector<4x384xf32>
    %159 = vector.broadcast %157 : vector<1x384xf32> to vector<4x384xf32>
    %160 = arith.mulf %158, %159 : vector<4x384xf32>
    %161 = arith.addf %156, %160 : vector<4x384xf32>
    %162 = vector.extract_strided_slice %146 {offsets = [3, 0], sizes = [1, 384], strides = [1, 1]} : vector<4x384xf32> to vector<1x384xf32>
    %163 = vector.broadcast %56 : vector<4x1xf32> to vector<4x384xf32>
    %164 = vector.broadcast %162 : vector<1x384xf32> to vector<4x384xf32>
    %165 = arith.mulf %163, %164 : vector<4x384xf32>
    %166 = arith.addf %161, %165 : vector<4x384xf32>
    %c1_i32 = arith.constant 1 : i32
    %167 = tpu.dynamic_rotate %1 by %c1_i32 dim 1 : vector<4x384xf32>, i32 -> vector<4x384xf32>
    %168 = vector.extract_strided_slice %167 {offsets = [0, 0], sizes = [1, 384], strides = [1, 1]} : vector<4x384xf32> to vector<1x384xf32>
    %169 = vector.broadcast %58 : vector<4x1xf32> to vector<4x384xf32>
    %170 = vector.broadcast %168 : vector<1x384xf32> to vector<4x384xf32>
    %171 = arith.mulf %169, %170 : vector<4x384xf32>
    %172 = arith.addf %166, %171 : vector<4x384xf32>
    %173 = vector.extract_strided_slice %167 {offsets = [1, 0], sizes = [1, 384], strides = [1, 1]} : vector<4x384xf32> to vector<1x384xf32>
    %174 = vector.broadcast %60 : vector<4x1xf32> to vector<4x384xf32>
    %175 = vector.broadcast %173 : vector<1x384xf32> to vector<4x384xf32>
    %176 = arith.mulf %174, %175 : vector<4x384xf32>
    %177 = arith.addf %172, %176 : vector<4x384xf32>
    %178 = vector.extract_strided_slice %167 {offsets = [2, 0], sizes = [1, 384], strides = [1, 1]} : vector<4x384xf32> to vector<1x384xf32>
    %179 = vector.broadcast %62 : vector<4x1xf32> to vector<4x384xf32>
    %180 = vector.broadcast %178 : vector<1x384xf32> to vector<4x384xf32>
    %181 = arith.mulf %179, %180 : vector<4x384xf32>
    %182 = arith.addf %177, %181 : vector<4x384xf32>
    %183 = vector.extract_strided_slice %167 {offsets = [3, 0], sizes = [1, 384], strides = [1, 1]} : vector<4x384xf32> to vector<1x384xf32>
    %184 = vector.broadcast %64 : vector<4x1xf32> to vector<4x384xf32>
    %185 = vector.broadcast %183 : vector<1x384xf32> to vector<4x384xf32>
    %186 = arith.mulf %184, %185 : vector<4x384xf32>
    %187 = arith.addf %182, %186 : vector<4x384xf32>
    %188 = vector.extract_strided_slice %1 {offsets = [0, 0], sizes = [1, 384], strides = [1, 1]} : vector<4x384xf32> to vector<1x384xf32>
    %189 = vector.broadcast %66 : vector<4x1xf32> to vector<4x384xf32>
    %190 = vector.broadcast %188 : vector<1x384xf32> to vector<4x384xf32>
    %191 = arith.mulf %189, %190 : vector<4x384xf32>
    %192 = arith.addf %187, %191 : vector<4x384xf32>
    %193 = vector.extract_strided_slice %1 {offsets = [1, 0], sizes = [1, 384], strides = [1, 1]} : vector<4x384xf32> to vector<1x384xf32>
    %194 = vector.broadcast %68 : vector<4x1xf32> to vector<4x384xf32>
    %195 = vector.broadcast %193 : vector<1x384xf32> to vector<4x384xf32>
    %196 = arith.mulf %194, %195 : vector<4x384xf32>
    %197 = arith.addf %192, %196 : vector<4x384xf32>
    %198 = vector.extract_strided_slice %1 {offsets = [2, 0], sizes = [1, 384], strides = [1, 1]} : vector<4x384xf32> to vector<1x384xf32>
    %199 = vector.broadcast %70 : vector<4x1xf32> to vector<4x384xf32>
    %200 = vector.broadcast %198 : vector<1x384xf32> to vector<4x384xf32>
    %201 = arith.mulf %199, %200 : vector<4x384xf32>
    %202 = arith.addf %197, %201 : vector<4x384xf32>
    %203 = vector.extract_strided_slice %1 {offsets = [3, 0], sizes = [1, 384], strides = [1, 1]} : vector<4x384xf32> to vector<1x384xf32>
    %204 = vector.broadcast %72 : vector<4x1xf32> to vector<4x384xf32>
    %205 = vector.broadcast %203 : vector<1x384xf32> to vector<4x384xf32>
    %206 = arith.mulf %204, %205 : vector<4x384xf32>
    %207 = arith.addf %202, %206 : vector<4x384xf32>
    %c383_i32 = arith.constant 383 : i32
    %208 = tpu.dynamic_rotate %1 by %c383_i32 dim 1 : vector<4x384xf32>, i32 -> vector<4x384xf32>
    %209 = vector.extract_strided_slice %208 {offsets = [0, 0], sizes = [1, 384], strides = [1, 1]} : vector<4x384xf32> to vector<1x384xf32>
    %210 = vector.broadcast %74 : vector<4x1xf32> to vector<4x384xf32>
    %211 = vector.broadcast %209 : vector<1x384xf32> to vector<4x384xf32>
    %212 = arith.mulf %210, %211 : vector<4x384xf32>
    %213 = arith.addf %207, %212 : vector<4x384xf32>
    %214 = vector.extract_strided_slice %208 {offsets = [1, 0], sizes = [1, 384], strides = [1, 1]} : vector<4x384xf32> to vector<1x384xf32>
    %215 = vector.broadcast %76 : vector<4x1xf32> to vector<4x384xf32>
    %216 = vector.broadcast %214 : vector<1x384xf32> to vector<4x384xf32>
    %217 = arith.mulf %215, %216 : vector<4x384xf32>
    %218 = arith.addf %213, %217 : vector<4x384xf32>
    %219 = vector.extract_strided_slice %208 {offsets = [2, 0], sizes = [1, 384], strides = [1, 1]} : vector<4x384xf32> to vector<1x384xf32>
    %220 = vector.broadcast %78 : vector<4x1xf32> to vector<4x384xf32>
    %221 = vector.broadcast %219 : vector<1x384xf32> to vector<4x384xf32>
    %222 = arith.mulf %220, %221 : vector<4x384xf32>
    %223 = arith.addf %218, %222 : vector<4x384xf32>
    %224 = vector.extract_strided_slice %208 {offsets = [3, 0], sizes = [1, 384], strides = [1, 1]} : vector<4x384xf32> to vector<1x384xf32>
    %225 = vector.broadcast %80 : vector<4x1xf32> to vector<4x384xf32>
    %226 = vector.broadcast %224 : vector<1x384xf32> to vector<4x384xf32>
    %227 = arith.mulf %225, %226 : vector<4x384xf32>
    %228 = arith.addf %223, %227 : vector<4x384xf32>
    %c367_i32 = arith.constant 367 : i32
    %229 = tpu.dynamic_rotate %1 by %c367_i32 dim 1 : vector<4x384xf32>, i32 -> vector<4x384xf32>
    %230 = vector.extract_strided_slice %229 {offsets = [0, 0], sizes = [1, 384], strides = [1, 1]} : vector<4x384xf32> to vector<1x384xf32>
    %231 = vector.broadcast %82 : vector<4x1xf32> to vector<4x384xf32>
    %232 = vector.broadcast %230 : vector<1x384xf32> to vector<4x384xf32>
    %233 = arith.mulf %231, %232 : vector<4x384xf32>
    %234 = arith.addf %228, %233 : vector<4x384xf32>
    %235 = vector.extract_strided_slice %229 {offsets = [1, 0], sizes = [1, 384], strides = [1, 1]} : vector<4x384xf32> to vector<1x384xf32>
    %236 = vector.broadcast %84 : vector<4x1xf32> to vector<4x384xf32>
    %237 = vector.broadcast %235 : vector<1x384xf32> to vector<4x384xf32>
    %238 = arith.mulf %236, %237 : vector<4x384xf32>
    %239 = arith.addf %234, %238 : vector<4x384xf32>
    %240 = vector.extract_strided_slice %229 {offsets = [2, 0], sizes = [1, 384], strides = [1, 1]} : vector<4x384xf32> to vector<1x384xf32>
    %241 = vector.broadcast %86 : vector<4x1xf32> to vector<4x384xf32>
    %242 = vector.broadcast %240 : vector<1x384xf32> to vector<4x384xf32>
    %243 = arith.mulf %241, %242 : vector<4x384xf32>
    %244 = arith.addf %239, %243 : vector<4x384xf32>
    %245 = vector.extract_strided_slice %229 {offsets = [3, 0], sizes = [1, 384], strides = [1, 1]} : vector<4x384xf32> to vector<1x384xf32>
    %246 = vector.broadcast %88 : vector<4x1xf32> to vector<4x384xf32>
    %247 = vector.broadcast %245 : vector<1x384xf32> to vector<4x384xf32>
    %248 = arith.mulf %246, %247 : vector<4x384xf32>
    %249 = arith.addf %244, %248 : vector<4x384xf32>
    %c366_i32 = arith.constant 366 : i32
    %250 = tpu.dynamic_rotate %1 by %c366_i32 dim 1 : vector<4x384xf32>, i32 -> vector<4x384xf32>
    %251 = vector.extract_strided_slice %250 {offsets = [0, 0], sizes = [1, 384], strides = [1, 1]} : vector<4x384xf32> to vector<1x384xf32>
    %252 = vector.broadcast %90 : vector<4x1xf32> to vector<4x384xf32>
    %253 = vector.broadcast %251 : vector<1x384xf32> to vector<4x384xf32>
    %254 = arith.mulf %252, %253 : vector<4x384xf32>
    %255 = arith.addf %249, %254 : vector<4x384xf32>
    %256 = vector.extract_strided_slice %250 {offsets = [1, 0], sizes = [1, 384], strides = [1, 1]} : vector<4x384xf32> to vector<1x384xf32>
    %257 = vector.broadcast %92 : vector<4x1xf32> to vector<4x384xf32>
    %258 = vector.broadcast %256 : vector<1x384xf32> to vector<4x384xf32>
    %259 = arith.mulf %257, %258 : vector<4x384xf32>
    %260 = arith.addf %255, %259 : vector<4x384xf32>
    %261 = vector.extract_strided_slice %250 {offsets = [2, 0], sizes = [1, 384], strides = [1, 1]} : vector<4x384xf32> to vector<1x384xf32>
    %262 = vector.broadcast %94 : vector<4x1xf32> to vector<4x384xf32>
    %263 = vector.broadcast %261 : vector<1x384xf32> to vector<4x384xf32>
    %264 = arith.mulf %262, %263 : vector<4x384xf32>
    %265 = arith.addf %260, %264 : vector<4x384xf32>
    %266 = vector.extract_strided_slice %250 {offsets = [3, 0], sizes = [1, 384], strides = [1, 1]} : vector<4x384xf32> to vector<1x384xf32>
    %267 = vector.broadcast %96 : vector<4x1xf32> to vector<4x384xf32>
    %268 = vector.broadcast %266 : vector<1x384xf32> to vector<4x384xf32>
    %269 = arith.mulf %267, %268 : vector<4x384xf32>
    %270 = arith.addf %265, %269 : vector<4x384xf32>
    %c365_i32 = arith.constant 365 : i32
    %271 = tpu.dynamic_rotate %1 by %c365_i32 dim 1 : vector<4x384xf32>, i32 -> vector<4x384xf32>
    %272 = vector.extract_strided_slice %271 {offsets = [0, 0], sizes = [1, 384], strides = [1, 1]} : vector<4x384xf32> to vector<1x384xf32>
    %273 = vector.broadcast %98 : vector<4x1xf32> to vector<4x384xf32>
    %274 = vector.broadcast %272 : vector<1x384xf32> to vector<4x384xf32>
    %275 = arith.mulf %273, %274 : vector<4x384xf32>
    %276 = arith.addf %270, %275 : vector<4x384xf32>
    %277 = vector.extract_strided_slice %271 {offsets = [1, 0], sizes = [1, 384], strides = [1, 1]} : vector<4x384xf32> to vector<1x384xf32>
    %278 = vector.broadcast %100 : vector<4x1xf32> to vector<4x384xf32>
    %279 = vector.broadcast %277 : vector<1x384xf32> to vector<4x384xf32>
    %280 = arith.mulf %278, %279 : vector<4x384xf32>
    %281 = arith.addf %276, %280 : vector<4x384xf32>
    %282 = vector.extract_strided_slice %271 {offsets = [2, 0], sizes = [1, 384], strides = [1, 1]} : vector<4x384xf32> to vector<1x384xf32>
    %283 = vector.broadcast %102 : vector<4x1xf32> to vector<4x384xf32>
    %284 = vector.broadcast %282 : vector<1x384xf32> to vector<4x384xf32>
    %285 = arith.mulf %283, %284 : vector<4x384xf32>
    %286 = arith.addf %281, %285 : vector<4x384xf32>
    %287 = vector.extract_strided_slice %271 {offsets = [3, 0], sizes = [1, 384], strides = [1, 1]} : vector<4x384xf32> to vector<1x384xf32>
    %288 = vector.broadcast %104 : vector<4x1xf32> to vector<4x384xf32>
    %289 = vector.broadcast %287 : vector<1x384xf32> to vector<4x384xf32>
    %290 = arith.mulf %288, %289 : vector<4x384xf32>
    %291 = arith.addf %286, %290 : vector<4x384xf32>
    %292 = vector.broadcast %3 : vector<4x1xf32> to vector<4x384xf32>
    %293 = arith.addf %291, %292 : vector<4x384xf32>
    %294 = arith.mulf %293, %30 : vector<4x384xf32>
    %cst_90 = arith.constant dense<0.000000e+00> : vector<4xf32>
    %295 = vector.multi_reduction <add>, %294, %cst_90 [1] : vector<4x384xf32> to vector<4xf32>
    %296 = vector.shape_cast %295 : vector<4xf32> to vector<4x1xf32>
    %cst_91 = arith.constant 3.906250e-03 : f32
    %297 = vector.broadcast %cst_91 : f32 to vector<4x1xf32>
    %298 = arith.mulf %296, %297 : vector<4x1xf32>
    %299 = vector.broadcast %298 : vector<4x1xf32> to vector<4x384xf32>
    %300 = arith.subf %293, %299 : vector<4x384xf32>
    %301 = arith.mulf %300, %30 : vector<4x384xf32>
    %302 = arith.mulf %301, %301 : vector<4x384xf32>
    %cst_92 = arith.constant dense<0.000000e+00> : vector<4xf32>
    %303 = vector.multi_reduction <add>, %302, %cst_92 [1] : vector<4x384xf32> to vector<4xf32>
    %304 = vector.shape_cast %303 : vector<4xf32> to vector<4x1xf32>
    %cst_93 = arith.constant 3.906250e-03 : f32
    %305 = vector.broadcast %cst_93 : f32 to vector<4x1xf32>
    %306 = arith.mulf %304, %305 : vector<4x1xf32>
    %cst_94 = arith.constant 9.99999974E-6 : f32
    %307 = vector.broadcast %cst_94 : f32 to vector<4x1xf32>
    %308 = arith.addf %306, %307 : vector<4x1xf32>
    %309 = math.rsqrt %308 : vector<4x1xf32>
    %310 = arith.mulf %309, %5 : vector<4x1xf32>
    %311 = vector.broadcast %310 : vector<4x1xf32> to vector<4x384xf32>
    %312 = arith.mulf %301, %311 : vector<4x384xf32>
    %313 = arith.addf %312, %32 : vector<4x384xf32>
    %cst_95 = arith.constant 0.000000e+00 : f32
    %314 = vector.broadcast %cst_95 : f32 to vector<4x384xf32>
    %315 = arith.cmpf oge, %313, %314 : vector<4x384xf32>
    %cst_96 = arith.constant 0.00999999977 : f32
    %316 = vector.broadcast %cst_96 : f32 to vector<4x384xf32>
    %317 = arith.mulf %313, %316 : vector<4x384xf32>
    %318 = arith.select %315, %313, %317 : vector<4x384xi1>, vector<4x384xf32>
    %c19_i32_97 = arith.constant 19 : i32
    %319 = tpu.dynamic_rotate %318 by %c19_i32_97 dim 1 : vector<4x384xf32>, i32 -> vector<4x384xf32>
    %320 = vector.extract_strided_slice %319 {offsets = [0, 0], sizes = [1, 384], strides = [1, 1]} : vector<4x384xf32> to vector<1x384xf32>
    %321 = vector.broadcast %34 : vector<4x1xf32> to vector<4x384xf32>
    %322 = vector.broadcast %320 : vector<1x384xf32> to vector<4x384xf32>
    %323 = arith.mulf %321, %322 : vector<4x384xf32>
    %324 = vector.extract_strided_slice %319 {offsets = [1, 0], sizes = [1, 384], strides = [1, 1]} : vector<4x384xf32> to vector<1x384xf32>
    %325 = vector.broadcast %36 : vector<4x1xf32> to vector<4x384xf32>
    %326 = vector.broadcast %324 : vector<1x384xf32> to vector<4x384xf32>
    %327 = arith.mulf %325, %326 : vector<4x384xf32>
    %328 = arith.addf %323, %327 : vector<4x384xf32>
    %329 = vector.extract_strided_slice %319 {offsets = [2, 0], sizes = [1, 384], strides = [1, 1]} : vector<4x384xf32> to vector<1x384xf32>
    %330 = vector.broadcast %38 : vector<4x1xf32> to vector<4x384xf32>
    %331 = vector.broadcast %329 : vector<1x384xf32> to vector<4x384xf32>
    %332 = arith.mulf %330, %331 : vector<4x384xf32>
    %333 = arith.addf %328, %332 : vector<4x384xf32>
    %334 = vector.extract_strided_slice %319 {offsets = [3, 0], sizes = [1, 384], strides = [1, 1]} : vector<4x384xf32> to vector<1x384xf32>
    %335 = vector.broadcast %40 : vector<4x1xf32> to vector<4x384xf32>
    %336 = vector.broadcast %334 : vector<1x384xf32> to vector<4x384xf32>
    %337 = arith.mulf %335, %336 : vector<4x384xf32>
    %338 = arith.addf %333, %337 : vector<4x384xf32>
    %c18_i32_98 = arith.constant 18 : i32
    %339 = tpu.dynamic_rotate %318 by %c18_i32_98 dim 1 : vector<4x384xf32>, i32 -> vector<4x384xf32>
    %340 = vector.extract_strided_slice %339 {offsets = [0, 0], sizes = [1, 384], strides = [1, 1]} : vector<4x384xf32> to vector<1x384xf32>
    %341 = vector.broadcast %42 : vector<4x1xf32> to vector<4x384xf32>
    %342 = vector.broadcast %340 : vector<1x384xf32> to vector<4x384xf32>
    %343 = arith.mulf %341, %342 : vector<4x384xf32>
    %344 = arith.addf %338, %343 : vector<4x384xf32>
    %345 = vector.extract_strided_slice %339 {offsets = [1, 0], sizes = [1, 384], strides = [1, 1]} : vector<4x384xf32> to vector<1x384xf32>
    %346 = vector.broadcast %44 : vector<4x1xf32> to vector<4x384xf32>
    %347 = vector.broadcast %345 : vector<1x384xf32> to vector<4x384xf32>
    %348 = arith.mulf %346, %347 : vector<4x384xf32>
    %349 = arith.addf %344, %348 : vector<4x384xf32>
    %350 = vector.extract_strided_slice %339 {offsets = [2, 0], sizes = [1, 384], strides = [1, 1]} : vector<4x384xf32> to vector<1x384xf32>
    %351 = vector.broadcast %46 : vector<4x1xf32> to vector<4x384xf32>
    %352 = vector.broadcast %350 : vector<1x384xf32> to vector<4x384xf32>
    %353 = arith.mulf %351, %352 : vector<4x384xf32>
    %354 = arith.addf %349, %353 : vector<4x384xf32>
    %355 = vector.extract_strided_slice %339 {offsets = [3, 0], sizes = [1, 384], strides = [1, 1]} : vector<4x384xf32> to vector<1x384xf32>
    %356 = vector.broadcast %48 : vector<4x1xf32> to vector<4x384xf32>
    %357 = vector.broadcast %355 : vector<1x384xf32> to vector<4x384xf32>
    %358 = arith.mulf %356, %357 : vector<4x384xf32>
    %359 = arith.addf %354, %358 : vector<4x384xf32>
    %c17_i32_99 = arith.constant 17 : i32
    %360 = tpu.dynamic_rotate %318 by %c17_i32_99 dim 1 : vector<4x384xf32>, i32 -> vector<4x384xf32>
    %361 = vector.extract_strided_slice %360 {offsets = [0, 0], sizes = [1, 384], strides = [1, 1]} : vector<4x384xf32> to vector<1x384xf32>
    %362 = vector.broadcast %50 : vector<4x1xf32> to vector<4x384xf32>
    %363 = vector.broadcast %361 : vector<1x384xf32> to vector<4x384xf32>
    %364 = arith.mulf %362, %363 : vector<4x384xf32>
    %365 = arith.addf %359, %364 : vector<4x384xf32>
    %366 = vector.extract_strided_slice %360 {offsets = [1, 0], sizes = [1, 384], strides = [1, 1]} : vector<4x384xf32> to vector<1x384xf32>
    %367 = vector.broadcast %52 : vector<4x1xf32> to vector<4x384xf32>
    %368 = vector.broadcast %366 : vector<1x384xf32> to vector<4x384xf32>
    %369 = arith.mulf %367, %368 : vector<4x384xf32>
    %370 = arith.addf %365, %369 : vector<4x384xf32>
    %371 = vector.extract_strided_slice %360 {offsets = [2, 0], sizes = [1, 384], strides = [1, 1]} : vector<4x384xf32> to vector<1x384xf32>
    %372 = vector.broadcast %54 : vector<4x1xf32> to vector<4x384xf32>
    %373 = vector.broadcast %371 : vector<1x384xf32> to vector<4x384xf32>
    %374 = arith.mulf %372, %373 : vector<4x384xf32>
    %375 = arith.addf %370, %374 : vector<4x384xf32>
    %376 = vector.extract_strided_slice %360 {offsets = [3, 0], sizes = [1, 384], strides = [1, 1]} : vector<4x384xf32> to vector<1x384xf32>
    %377 = vector.broadcast %56 : vector<4x1xf32> to vector<4x384xf32>
    %378 = vector.broadcast %376 : vector<1x384xf32> to vector<4x384xf32>
    %379 = arith.mulf %377, %378 : vector<4x384xf32>
    %380 = arith.addf %375, %379 : vector<4x384xf32>
    %c1_i32_100 = arith.constant 1 : i32
    %381 = tpu.dynamic_rotate %318 by %c1_i32_100 dim 1 : vector<4x384xf32>, i32 -> vector<4x384xf32>
    %382 = vector.extract_strided_slice %381 {offsets = [0, 0], sizes = [1, 384], strides = [1, 1]} : vector<4x384xf32> to vector<1x384xf32>
    %383 = vector.broadcast %58 : vector<4x1xf32> to vector<4x384xf32>
    %384 = vector.broadcast %382 : vector<1x384xf32> to vector<4x384xf32>
    %385 = arith.mulf %383, %384 : vector<4x384xf32>
    %386 = arith.addf %380, %385 : vector<4x384xf32>
    %387 = vector.extract_strided_slice %381 {offsets = [1, 0], sizes = [1, 384], strides = [1, 1]} : vector<4x384xf32> to vector<1x384xf32>
    %388 = vector.broadcast %60 : vector<4x1xf32> to vector<4x384xf32>
    %389 = vector.broadcast %387 : vector<1x384xf32> to vector<4x384xf32>
    %390 = arith.mulf %388, %389 : vector<4x384xf32>
    %391 = arith.addf %386, %390 : vector<4x384xf32>
    %392 = vector.extract_strided_slice %381 {offsets = [2, 0], sizes = [1, 384], strides = [1, 1]} : vector<4x384xf32> to vector<1x384xf32>
    %393 = vector.broadcast %62 : vector<4x1xf32> to vector<4x384xf32>
    %394 = vector.broadcast %392 : vector<1x384xf32> to vector<4x384xf32>
    %395 = arith.mulf %393, %394 : vector<4x384xf32>
    %396 = arith.addf %391, %395 : vector<4x384xf32>
    %397 = vector.extract_strided_slice %381 {offsets = [3, 0], sizes = [1, 384], strides = [1, 1]} : vector<4x384xf32> to vector<1x384xf32>
    %398 = vector.broadcast %64 : vector<4x1xf32> to vector<4x384xf32>
    %399 = vector.broadcast %397 : vector<1x384xf32> to vector<4x384xf32>
    %400 = arith.mulf %398, %399 : vector<4x384xf32>
    %401 = arith.addf %396, %400 : vector<4x384xf32>
    %402 = vector.extract_strided_slice %318 {offsets = [0, 0], sizes = [1, 384], strides = [1, 1]} : vector<4x384xf32> to vector<1x384xf32>
    %403 = vector.broadcast %66 : vector<4x1xf32> to vector<4x384xf32>
    %404 = vector.broadcast %402 : vector<1x384xf32> to vector<4x384xf32>
    %405 = arith.mulf %403, %404 : vector<4x384xf32>
    %406 = arith.addf %401, %405 : vector<4x384xf32>
    %407 = vector.extract_strided_slice %318 {offsets = [1, 0], sizes = [1, 384], strides = [1, 1]} : vector<4x384xf32> to vector<1x384xf32>
    %408 = vector.broadcast %68 : vector<4x1xf32> to vector<4x384xf32>
    %409 = vector.broadcast %407 : vector<1x384xf32> to vector<4x384xf32>
    %410 = arith.mulf %408, %409 : vector<4x384xf32>
    %411 = arith.addf %406, %410 : vector<4x384xf32>
    %412 = vector.extract_strided_slice %318 {offsets = [2, 0], sizes = [1, 384], strides = [1, 1]} : vector<4x384xf32> to vector<1x384xf32>
    %413 = vector.broadcast %70 : vector<4x1xf32> to vector<4x384xf32>
    %414 = vector.broadcast %412 : vector<1x384xf32> to vector<4x384xf32>
    %415 = arith.mulf %413, %414 : vector<4x384xf32>
    %416 = arith.addf %411, %415 : vector<4x384xf32>
    %417 = vector.extract_strided_slice %318 {offsets = [3, 0], sizes = [1, 384], strides = [1, 1]} : vector<4x384xf32> to vector<1x384xf32>
    %418 = vector.broadcast %72 : vector<4x1xf32> to vector<4x384xf32>
    %419 = vector.broadcast %417 : vector<1x384xf32> to vector<4x384xf32>
    %420 = arith.mulf %418, %419 : vector<4x384xf32>
    %421 = arith.addf %416, %420 : vector<4x384xf32>
    %c383_i32_101 = arith.constant 383 : i32
    %422 = tpu.dynamic_rotate %318 by %c383_i32_101 dim 1 : vector<4x384xf32>, i32 -> vector<4x384xf32>
    %423 = vector.extract_strided_slice %422 {offsets = [0, 0], sizes = [1, 384], strides = [1, 1]} : vector<4x384xf32> to vector<1x384xf32>
    %424 = vector.broadcast %74 : vector<4x1xf32> to vector<4x384xf32>
    %425 = vector.broadcast %423 : vector<1x384xf32> to vector<4x384xf32>
    %426 = arith.mulf %424, %425 : vector<4x384xf32>
    %427 = arith.addf %421, %426 : vector<4x384xf32>
    %428 = vector.extract_strided_slice %422 {offsets = [1, 0], sizes = [1, 384], strides = [1, 1]} : vector<4x384xf32> to vector<1x384xf32>
    %429 = vector.broadcast %76 : vector<4x1xf32> to vector<4x384xf32>
    %430 = vector.broadcast %428 : vector<1x384xf32> to vector<4x384xf32>
    %431 = arith.mulf %429, %430 : vector<4x384xf32>
    %432 = arith.addf %427, %431 : vector<4x384xf32>
    %433 = vector.extract_strided_slice %422 {offsets = [2, 0], sizes = [1, 384], strides = [1, 1]} : vector<4x384xf32> to vector<1x384xf32>
    %434 = vector.broadcast %78 : vector<4x1xf32> to vector<4x384xf32>
    %435 = vector.broadcast %433 : vector<1x384xf32> to vector<4x384xf32>
    %436 = arith.mulf %434, %435 : vector<4x384xf32>
    %437 = arith.addf %432, %436 : vector<4x384xf32>
    %438 = vector.extract_strided_slice %422 {offsets = [3, 0], sizes = [1, 384], strides = [1, 1]} : vector<4x384xf32> to vector<1x384xf32>
    %439 = vector.broadcast %80 : vector<4x1xf32> to vector<4x384xf32>
    %440 = vector.broadcast %438 : vector<1x384xf32> to vector<4x384xf32>
    %441 = arith.mulf %439, %440 : vector<4x384xf32>
    %442 = arith.addf %437, %441 : vector<4x384xf32>
    %c367_i32_102 = arith.constant 367 : i32
    %443 = tpu.dynamic_rotate %318 by %c367_i32_102 dim 1 : vector<4x384xf32>, i32 -> vector<4x384xf32>
    %444 = vector.extract_strided_slice %443 {offsets = [0, 0], sizes = [1, 384], strides = [1, 1]} : vector<4x384xf32> to vector<1x384xf32>
    %445 = vector.broadcast %82 : vector<4x1xf32> to vector<4x384xf32>
    %446 = vector.broadcast %444 : vector<1x384xf32> to vector<4x384xf32>
    %447 = arith.mulf %445, %446 : vector<4x384xf32>
    %448 = arith.addf %442, %447 : vector<4x384xf32>
    %449 = vector.extract_strided_slice %443 {offsets = [1, 0], sizes = [1, 384], strides = [1, 1]} : vector<4x384xf32> to vector<1x384xf32>
    %450 = vector.broadcast %84 : vector<4x1xf32> to vector<4x384xf32>
    %451 = vector.broadcast %449 : vector<1x384xf32> to vector<4x384xf32>
    %452 = arith.mulf %450, %451 : vector<4x384xf32>
    %453 = arith.addf %448, %452 : vector<4x384xf32>
    %454 = vector.extract_strided_slice %443 {offsets = [2, 0], sizes = [1, 384], strides = [1, 1]} : vector<4x384xf32> to vector<1x384xf32>
    %455 = vector.broadcast %86 : vector<4x1xf32> to vector<4x384xf32>
    %456 = vector.broadcast %454 : vector<1x384xf32> to vector<4x384xf32>
    %457 = arith.mulf %455, %456 : vector<4x384xf32>
    %458 = arith.addf %453, %457 : vector<4x384xf32>
    %459 = vector.extract_strided_slice %443 {offsets = [3, 0], sizes = [1, 384], strides = [1, 1]} : vector<4x384xf32> to vector<1x384xf32>
    %460 = vector.broadcast %88 : vector<4x1xf32> to vector<4x384xf32>
    %461 = vector.broadcast %459 : vector<1x384xf32> to vector<4x384xf32>
    %462 = arith.mulf %460, %461 : vector<4x384xf32>
    %463 = arith.addf %458, %462 : vector<4x384xf32>
    %c366_i32_103 = arith.constant 366 : i32
    %464 = tpu.dynamic_rotate %318 by %c366_i32_103 dim 1 : vector<4x384xf32>, i32 -> vector<4x384xf32>
    %465 = vector.extract_strided_slice %464 {offsets = [0, 0], sizes = [1, 384], strides = [1, 1]} : vector<4x384xf32> to vector<1x384xf32>
    %466 = vector.broadcast %90 : vector<4x1xf32> to vector<4x384xf32>
    %467 = vector.broadcast %465 : vector<1x384xf32> to vector<4x384xf32>
    %468 = arith.mulf %466, %467 : vector<4x384xf32>
    %469 = arith.addf %463, %468 : vector<4x384xf32>
    %470 = vector.extract_strided_slice %464 {offsets = [1, 0], sizes = [1, 384], strides = [1, 1]} : vector<4x384xf32> to vector<1x384xf32>
    %471 = vector.broadcast %92 : vector<4x1xf32> to vector<4x384xf32>
    %472 = vector.broadcast %470 : vector<1x384xf32> to vector<4x384xf32>
    %473 = arith.mulf %471, %472 : vector<4x384xf32>
    %474 = arith.addf %469, %473 : vector<4x384xf32>
    %475 = vector.extract_strided_slice %464 {offsets = [2, 0], sizes = [1, 384], strides = [1, 1]} : vector<4x384xf32> to vector<1x384xf32>
    %476 = vector.broadcast %94 : vector<4x1xf32> to vector<4x384xf32>
    %477 = vector.broadcast %475 : vector<1x384xf32> to vector<4x384xf32>
    %478 = arith.mulf %476, %477 : vector<4x384xf32>
    %479 = arith.addf %474, %478 : vector<4x384xf32>
    %480 = vector.extract_strided_slice %464 {offsets = [3, 0], sizes = [1, 384], strides = [1, 1]} : vector<4x384xf32> to vector<1x384xf32>
    %481 = vector.broadcast %96 : vector<4x1xf32> to vector<4x384xf32>
    %482 = vector.broadcast %480 : vector<1x384xf32> to vector<4x384xf32>
    %483 = arith.mulf %481, %482 : vector<4x384xf32>
    %484 = arith.addf %479, %483 : vector<4x384xf32>
    %c365_i32_104 = arith.constant 365 : i32
    %485 = tpu.dynamic_rotate %318 by %c365_i32_104 dim 1 : vector<4x384xf32>, i32 -> vector<4x384xf32>
    %486 = vector.extract_strided_slice %485 {offsets = [0, 0], sizes = [1, 384], strides = [1, 1]} : vector<4x384xf32> to vector<1x384xf32>
    %487 = vector.broadcast %98 : vector<4x1xf32> to vector<4x384xf32>
    %488 = vector.broadcast %486 : vector<1x384xf32> to vector<4x384xf32>
    %489 = arith.mulf %487, %488 : vector<4x384xf32>
    %490 = arith.addf %484, %489 : vector<4x384xf32>
    %491 = vector.extract_strided_slice %485 {offsets = [1, 0], sizes = [1, 384], strides = [1, 1]} : vector<4x384xf32> to vector<1x384xf32>
    %492 = vector.broadcast %100 : vector<4x1xf32> to vector<4x384xf32>
    %493 = vector.broadcast %491 : vector<1x384xf32> to vector<4x384xf32>
    %494 = arith.mulf %492, %493 : vector<4x384xf32>
    %495 = arith.addf %490, %494 : vector<4x384xf32>
    %496 = vector.extract_strided_slice %485 {offsets = [2, 0], sizes = [1, 384], strides = [1, 1]} : vector<4x384xf32> to vector<1x384xf32>
    %497 = vector.broadcast %102 : vector<4x1xf32> to vector<4x384xf32>
    %498 = vector.broadcast %496 : vector<1x384xf32> to vector<4x384xf32>
    %499 = arith.mulf %497, %498 : vector<4x384xf32>
    %500 = arith.addf %495, %499 : vector<4x384xf32>
    %501 = vector.extract_strided_slice %485 {offsets = [3, 0], sizes = [1, 384], strides = [1, 1]} : vector<4x384xf32> to vector<1x384xf32>
    %502 = vector.broadcast %104 : vector<4x1xf32> to vector<4x384xf32>
    %503 = vector.broadcast %501 : vector<1x384xf32> to vector<4x384xf32>
    %504 = arith.mulf %502, %503 : vector<4x384xf32>
    %505 = arith.addf %500, %504 : vector<4x384xf32>
    %506 = vector.broadcast %3 : vector<4x1xf32> to vector<4x384xf32>
    %507 = arith.addf %505, %506 : vector<4x384xf32>
    %508 = arith.mulf %507, %30 : vector<4x384xf32>
    %cst_105 = arith.constant dense<0.000000e+00> : vector<4xf32>
    %509 = vector.multi_reduction <add>, %508, %cst_105 [1] : vector<4x384xf32> to vector<4xf32>
    %510 = vector.shape_cast %509 : vector<4xf32> to vector<4x1xf32>
    %cst_106 = arith.constant 3.906250e-03 : f32
    %511 = vector.broadcast %cst_106 : f32 to vector<4x1xf32>
    %512 = arith.mulf %510, %511 : vector<4x1xf32>
    %513 = vector.broadcast %512 : vector<4x1xf32> to vector<4x384xf32>
    %514 = arith.subf %507, %513 : vector<4x384xf32>
    %515 = arith.mulf %514, %30 : vector<4x384xf32>
    %516 = arith.mulf %515, %515 : vector<4x384xf32>
    %cst_107 = arith.constant dense<0.000000e+00> : vector<4xf32>
    %517 = vector.multi_reduction <add>, %516, %cst_107 [1] : vector<4x384xf32> to vector<4xf32>
    %518 = vector.shape_cast %517 : vector<4xf32> to vector<4x1xf32>
    %cst_108 = arith.constant 3.906250e-03 : f32
    %519 = vector.broadcast %cst_108 : f32 to vector<4x1xf32>
    %520 = arith.mulf %518, %519 : vector<4x1xf32>
    %cst_109 = arith.constant 9.99999974E-6 : f32
    %521 = vector.broadcast %cst_109 : f32 to vector<4x1xf32>
    %522 = arith.addf %520, %521 : vector<4x1xf32>
    %523 = math.rsqrt %522 : vector<4x1xf32>
    %524 = arith.mulf %523, %5 : vector<4x1xf32>
    %525 = vector.broadcast %524 : vector<4x1xf32> to vector<4x384xf32>
    %526 = arith.mulf %515, %525 : vector<4x384xf32>
    %527 = arith.addf %526, %32 : vector<4x384xf32>
    %528 = arith.addf %527, %1 : vector<4x384xf32>
    %cst_110 = arith.constant 0.000000e+00 : f32
    %529 = vector.broadcast %cst_110 : f32 to vector<4x384xf32>
    %530 = arith.cmpf oge, %528, %529 : vector<4x384xf32>
    %cst_111 = arith.constant 0.00999999977 : f32
    %531 = vector.broadcast %cst_111 : f32 to vector<4x384xf32>
    %532 = arith.mulf %528, %531 : vector<4x384xf32>
    %533 = arith.select %530, %528, %532 : vector<4x384xi1>, vector<4x384xf32>
    %c0_112 = arith.constant 0 : index
    %c0_113 = arith.constant 0 : index
    %c0_114 = arith.constant 0 : index
    %534 = vector.load %arg4[%c0_112, %c0_113, %c0_114] : memref<1x4x384xf32, #tpu.memory_space<vmem>>, vector<1x4x384xf32>
    %535 = vector.shape_cast %534 : vector<1x4x384xf32> to vector<4x384xf32>
    %536 = vector.shape_cast %533 : vector<4x384xf32> to vector<1x4x384xf32>
    tpu.vector_store %arg4[%c0_112, %c0_113, %c0_114], %536 {strides = array<i32>} : memref<1x4x384xf32, #tpu.memory_space<vmem>>, vector<1x4x384xf32>,
    return
  }
  func.func @transform_0(%arg0: i32) -> (i32, i32, i32) {
    %c0_i32 = arith.constant 0 : i32
    %c0_i32_0 = arith.constant 0 : i32
    %c0_i32_1 = arith.constant 0 : i32
    return %arg0, %c0_i32, %c0_i32_0 : i32, i32, i32
  }
  func.func @transform_1(%arg0: i32) -> (i32, i32, i32) {
    %c0_i32 = arith.constant 0 : i32
    %c0_i32_0 = arith.constant 0 : i32
    %c0_i32_1 = arith.constant 0 : i32
    %c0_i32_2 = arith.constant 0 : i32
    return %c0_i32, %c0_i32_0, %c0_i32_1 : i32, i32, i32
  }
  func.func @transform_2(%arg0: i32) -> (i32, i32, i32) {
    %c0_i32 = arith.constant 0 : i32
    %c0_i32_0 = arith.constant 0 : i32
    %c0_i32_1 = arith.constant 0 : i32
    %c0_i32_2 = arith.constant 0 : i32
    return %c0_i32, %c0_i32_0, %c0_i32_1 : i32, i32, i32
  }
  func.func @transform_3(%arg0: i32) -> (i32, i32, i32) {
    %c0_i32 = arith.constant 0 : i32
    %c0_i32_0 = arith.constant 0 : i32
    %c0_i32_1 = arith.constant 0 : i32
    return %arg0, %c0_i32, %c0_i32_0 : i32, i32, i32
  }
}

</mosaic_0001>

<bundles_post_ra>
// kernel: resnet_module_forward.1
= control target key start
LH: loop header
LB: loop body
LE: loop exit
PB: predicated region body
PF: predicated region fallthrough
CT: control target
= control target key end

     0   :  { %s2285_s12 = smov 0   ;;  %s3393_s0 = inlined_call_operand.vmem [shape: f32[2,4,384], index: 0, kind: input, shape index: {}, may-alias: {0,3}]   ;;  %s3394_s1 = inlined_call_operand.vmem [shape: f32[36,4,1], index: 1, kind: input, shape index: {}]   ;;  %s3395_s2 = inlined_call_operand.vmem [shape: f32[3,4,1], index: 2, kind: input, shape index: {}]   ;;  %s3396_s3 = inlined_call_operand.vmem [shape: f32[2,4,384], index: 3, kind: output, shape index: {}, may-alias: {0,3}]  }
   0x1 LB: > { %s2170_s13 = sadd.s32 4294967295, %s2253_s12   ;;  %p2174_p0 = scmp.ge.s32.totalorder %s2253_s12, 1  ;;  %s2253_s12 = sphi %s2285_s12, %s13_s12  }
   0x2   : > { %p137_p1 = scmp.lt.s32.totalorder %s2253_s12, 3 }
   0x4   : > { %p138_p2 = pnand %p2174_p0, %p137_p1 }
   0x6   : > { %141 = sbr.rel (%p138_p2) target bundleno = 1368 (0x558), region = 32 }
   0xb   : > { %v2183_v0 = vld [vmem:[%s3394_s1 + $0x8] sm:$0xf]  ;;  %v235_v1 = vld [vmem:[%s3394_s1] sm:$0xf]  ;;  %p161_p3 = scmp.lt.s32.totalorder %s2170_s13, 1  ;;  %v2255_v2 = vmov 0   ;;  %v178_v41 = vlaneseq }
   0xc   : > { %2239 = vset.pattern.permute.xlu1 %v2255_v2  ;;  %2238 = vset.pattern.permute.xlu0 %v2255_v2  ;;  %v2182_v3 = vld [vmem:[%s3394_s1 + $0x4] sm:$0xf]  ;;  %s2256_s24 = smov 19   ;;  %v2184_v7 = vld [vmem:[%s3394_s1 + $0xc] sm:$0xf]  ;;  %s2257_s29 = smov 18  }
   0xd   : > { %365 = vperm.xlu1 %2239, %v2183_v0   ;;  %322 = vperm.xlu0 %2238, %v235_v1   ;;  %s3504_s13 = smov (!%p161_p3, %s2170_s13), 1  ;;  %v2185_v8 = vld [vmem:[%s3394_s1 + $0x10] sm:$0xf]  ;;  %v2186_v9 = vld [vmem:[%s3394_s1 + $0x14] sm:$0xf]  ;;  %s2258_s11 = smov 17  }
   0xe   : > { %s2219_s20 = smul.u32 12, %s3504_s13  ;;  %v2187_v10 = vld [vmem:[%s3394_s1 + $0x18] sm:$0xf]  ;;  %v2188_v11 = vld [vmem:[%s3394_s1 + $0x1c] sm:$0xf]  ;;  %s2259_s25 = smov 1  }
   0xf   : > { %v2189_v12 = vld [vmem:[%s3394_s1 + $0x20] sm:$0xf]  ;;  %v2190_v13 = vld [vmem:[%s3394_s1 + $0x24] sm:$0xf]  ;;  %v2191_v14 = vld [vmem:[%s3394_s1 + $0x28] sm:$0xf] }
  0x10   : > { %s2310_s23 = scalar_lea.vmem %s3393_s0, %s2219_s20  ;;  %v2192_v15 = vld [vmem:[%s3394_s1 + $0x2c] sm:$0xf]  ;;  %v2193_v16 = vld [vmem:[%s3394_s1 + $0x30] sm:$0xf]  ;;  %v2194_v17 = vld [vmem:[%s3394_s1 + $0x34] sm:$0xf] }
  0x11   : > { %342 = vperm.xlu0 %2238, %v2182_v3   ;;  %v2313_v4 = vld [vmem:[%s2310_s23] sm:$0xff]  ;;  %v2316_v5 = vld [vmem:[%s2310_s23 + $0x8] sm:$0xf]  ;;  %v2195_v18 = vld [vmem:[%s3394_s1 + $0x38] sm:$0xf]  ;;  %s2260_s19 = smov 127  }
  0x12   : > { %310 = vrot.lane.b32.xlu1 %v2313_v4, %s2256_s24  ;;  %v2322_v6 = vcombine.high %v2313_v4, %v2313_v4  ;;  %v2196_v19 = vld [vmem:[%s3394_s1 + $0x3c] sm:$0xf]  ;;  %v2197_v20 = vld [vmem:[%s3394_s1 + $0x40] sm:$0xf]  ;;  %v2198_v21 = vld [vmem:[%s3394_s1 + $0x44] sm:$0xf] }
  0x13   : > { %v2199_v22 = vld [vmem:[%s3394_s1 + $0x48] sm:$0xf]  ;;  %v2200_v23 = vld [vmem:[%s3394_s1 + $0x4c] sm:$0xf]  ;;  %v2201_v24 = vld [vmem:[%s3394_s1 + $0x50] sm:$0xf] }
  0x14   : > { %3438 = vst [vmem:[#allocation2_spill] sm:$0xff] %v2322_v6  ;;  %v2202_v25 = vld [vmem:[%s3394_s1 + $0x54] sm:$0xf]  ;;  %v2203_v26 = vld [vmem:[%s3394_s1 + $0x58] sm:$0xf]  ;;  %s2261_s6 = smov 111  }
  0x15   : > { %314 = vrot.lane.b32.xlu0 %v2316_v5, %s2256_s24  ;;  %v2204_v27 = vld [vmem:[%s3394_s1 + $0x5c] sm:$0xf]  ;;  %v2205_v28 = vld [vmem:[%s3394_s1 + $0x60] sm:$0xf]  ;;  %v2206_v29 = vld [vmem:[%s3394_s1 + $0x64] sm:$0xf] }
  0x16   : > { %312 = vrot.lane.b32.xlu1 %v2322_v6, %s2256_s24  ;;  %v2207_v30 = vld [vmem:[%s3394_s1 + $0x68] sm:$0xf]  ;;  %v2208_v31 = vld [vmem:[%s3394_s1 + $0x6c] sm:$0xf]  ;;  %v2209_v32 = vld [vmem:[%s3394_s1 + $0x70] sm:$0xf] }
  0x17   : > { %s2262_s18 = smov 110   ;;  %v2210_v33 = vld [vmem:[%s3394_s1 + $0x74] sm:$0xf]  ;;  %v2211_v34 = vld [vmem:[%s3394_s1 + $0x78] sm:$0xf]  ;;  %s2263_s7 = smov 109  }
  0x18   : > { %v2212_v35 = vld [vmem:[%s3394_s1 + $0x7c] sm:$0xf]  ;;  %v2213_v36 = vld [vmem:[%s3394_s1 + $0x80] sm:$0xf]  ;;  %v2214_v37 = vld [vmem:[%s3394_s1 + $0x84] sm:$0xf] }
  0x19   : > { %388 = vperm.xlu0 %2238, %v2184_v7   ;;  %v2215_v38 = vld [vmem:[%s3394_s1 + $0x88] sm:$0xf]  ;;  %v2216_v39 = vld [vmem:[%s3394_s1 + $0x8c] sm:$0xf]  ;;  %v173_v40 = vld [vmem:[%s3395_s2] sm:$0xf] }
  0x1a   : > { %421 = vperm.xlu1 %2239, %v2185_v8   ;;  %v2476_v44 = vand.u32 127, %v178_v41  ;;  %v2478_v45 = vshrl.u32 %v178_v41, 7 }
  0x1c   : > { %vm316_vm0 = vcmp.lt.s32.totalorder %v2476_v44, 19  ;;  %v2484_v48 = vsub.s32 0, %v2478_v45  ;;  %v2487_v49 = vsub.s32 1, %v2478_v45  ;;  %v2490_v50 = vsub.s32 2, %v2478_v45 }
  0x1d   : > { %409 = vrot.lane.b32.xlu0 %v2313_v4, %s2257_s29  ;;  %v2499_v56 = vsub.s32 3, %v2478_v45  ;;  %vm415_vm1 = vcmp.lt.s32.totalorder %v2476_v44, 18  ;;  %vm517_vm2 = vcmp.lt.s32.totalorder %v2476_v44, 17  ;;  %vm3412_vm3 = vcmp.lt.s32.totalorder %v2476_v44, 1 }
  0x1e   : > { %411 = vrot.lane.b32.xlu1 %v2322_v6, %s2257_s29  ;;  %vm3411_vm4 = vcmp.lt.s32.totalorder %v2476_v44, 127  ;;  %vm3410_vm5 = vcmp.lt.s32.totalorder %v2476_v44, 111  ;;  %vm3409_vm6 = vcmp.lt.s32.totalorder %v2476_v44, 110  ;;  %vm3413_vm7 = vcmp.lt.s32.totalorder %v2476_v44, 109 }
  0x21   : > { %413 = vrot.lane.b32.xlu0 %v2316_v5, %s2257_s29 }
  0x22   : > { %444 = vperm.xlu1 %2239, %v2186_v9  }
  0x25   : > { %467 = vperm.xlu0 %2238, %v2187_v10  }
  0x26   : > { %490 = vperm.xlu1 %2239, %v2188_v11  }
  0x29   : > { %523 = vperm.xlu0 %2238, %v2189_v12  }
  0x2a   : > { %511 = vrot.lane.b32.xlu1 %v2313_v4, %s2258_s11 }
  0x2d   : > { %513 = vrot.lane.b32.xlu0 %v2322_v6, %s2258_s11 }
  0x2e   : > { %515 = vrot.lane.b32.xlu1 %v2316_v5, %s2258_s11 }
  0x31   : > { %546 = vperm.xlu0 %2238, %v2190_v13  }
  0x32   : > { %569 = vperm.xlu1 %2239, %v2191_v14  }
  0x35   : > { %592 = vperm.xlu0 %2238, %v2192_v15  }
  0x36   : > { %625 = vperm.xlu1 %2239, %v2193_v16  }
  0x39   : > { %613 = vrot.lane.b32.xlu0 %v2313_v4, %s2259_s25 }
  0x3a   : > { %615 = vrot.lane.b32.xlu1 %v2322_v6, %s2259_s25 }
  0x3d   : > { %617 = vrot.lane.b32.xlu0 %v2316_v5, %s2259_s25 }
  0x3e   : > { %648 = vperm.xlu1 %2239, %v2194_v17  }
  0x41   : > { %671 = vperm.xlu0 %2238, %v2195_v18  }
  0x42   : > { %694 = vperm.xlu1 %2239, %v2196_v19  }
  0x45   : > { %717 = vperm.xlu0 %2238, %v2197_v20  }
  0x46   : > { %755 = vperm.xlu1 %2239, %v2198_v21  }
  0x49   : > { %793 = vperm.xlu0 %2238, %v2199_v22  }
  0x4a   : > { %831 = vperm.xlu1 %2239, %v2200_v23  }
  0x4d   : > { %879 = vperm.xlu0 %2238, %v2201_v24  }
  0x4e   : > { %867 = vrot.lane.b32.xlu1 %v2313_v4, %s2260_s19 }
  0x51   : > { %869 = vrot.lane.b32.xlu0 %v2322_v6, %s2260_s19 }
  0x52   : > { %871 = vrot.lane.b32.xlu1 %v2316_v5, %s2260_s19 }
  0x55   : > { %902 = vperm.xlu0 %2238, %v2202_v25  }
  0x56   : > { %925 = vperm.xlu1 %2239, %v2203_v26  }
  0x59   : > { %948 = vperm.xlu0 %2238, %v2204_v27  }
  0x5a   : > { %981 = vperm.xlu1 %2239, %v2205_v28  }
  0x5d   : > { %969 = vrot.lane.b32.xlu0 %v2313_v4, %s2261_s6 }
  0x5e   : > { %971 = vrot.lane.b32.xlu1 %v2322_v6, %s2261_s6 }
  0x61   : > { %973 = vrot.lane.b32.xlu0 %v2316_v5, %s2261_s6 }
  0x62   : > { %1004 = vperm.xlu1 %2239, %v2206_v29  }
  0x65   : > { %1027 = vperm.xlu0 %2238, %v2207_v30  }
  0x66   : > { %1050 = vperm.xlu1 %2239, %v2208_v31  }
  0x69   : > { %1083 = vperm.xlu0 %2238, %v2209_v32  }
  0x6a   : > { %1071 = vrot.lane.b32.xlu1 %v2313_v4, %s2262_s18 }
  0x6d   : > { %1073 = vrot.lane.b32.xlu0 %v2322_v6, %s2262_s18 }
  0x6e   : > { %1075 = vrot.lane.b32.xlu1 %v2316_v5, %s2262_s18 }
  0x71   : > { %1106 = vperm.xlu0 %2238, %v2210_v33  }
  0x72   : > { %1129 = vperm.xlu1 %2239, %v2211_v34  }
  0x75   : > { %1152 = vperm.xlu0 %2238, %v2212_v35  }
  0x76   : > { %1185 = vperm.xlu1 %2239, %v2213_v36  }
  0x79   : > { %1173 = vrot.lane.b32.xlu0 %v2313_v4, %s2263_s7 }
  0x7a   : > { %1175 = vrot.lane.b32.xlu1 %v2322_v6, %s2263_s7 }
  0x7d   : > { %1177 = vrot.lane.b32.xlu0 %v2316_v5, %s2263_s7 }
  0x7e   : > { %1208 = vperm.xlu1 %2239, %v2214_v37  }
  0x81   : > { %1231 = vperm.xlu0 %2238, %v2215_v38  }
  0x82   : > { %1254 = vperm.xlu1 %2239, %v2216_v39  }
  0x85   : > { %1277 = vperm.xlu0 %2238, %v173_v40  }
  0x88   : > { %v2472_v42 = vpop.permute.xlu1 %365  ;;  %v2474_v43 = vpop.permute.xlu0 %322 }
  0x8c   : > { %v2480_v46 = vpop.permute.xlu0 %342  ;;  %v311_v47 = vpop.permute.xlu1 %310 }
  0x90   : > { %v315_v51 = vpop.permute.xlu0 %314  ;;  %v313_v52 = vpop.permute.xlu1 %312 }
  0x91   : > { %v319_v53 = vsel %vm316_vm0, %v315_v51, %v311_v47  ;;  %v317_v54 = vsel %vm316_vm0, %v313_v52, %v315_v51  ;;  %v318_v55 = vsel %vm316_vm0, %v311_v47, %v313_v52 }
  0x92   : > { %v328_v57 = vrot.slane %v319_v53, %v2484_v48  ;;  %v348_v58 = vrot.slane %v319_v53, %v2487_v49  ;;  %v332_v59 = vrot.slane %v318_v55, %v2484_v48  ;;  %v336_v60 = vrot.slane %v317_v54, %v2484_v48 }
  0x93   : > { %v352_v61 = vrot.slane %v318_v55, %v2487_v49  ;;  %v356_v62 = vrot.slane %v317_v54, %v2487_v49  ;;  %v371_v1 = vrot.slane %v319_v53, %v2490_v50  ;;  %v375_v2 = vrot.slane %v318_v55, %v2490_v50 }
  0x94   : > { %v337_v63 = vmul.f32 %v328_v57, %v2474_v43  ;;  %v357_v0 = vmul.f32 %v348_v58, %v2480_v46  ;;  %v2511_v3 = vpop.permute.xlu0 %388  ;;  %v338_v7 = vmul.f32 %v332_v59, %v2474_v43  ;;  %v339_v8 = vmul.f32 %v336_v60, %v2474_v43 }
  0x95   : > { %v358_v9 = vmul.f32 %v352_v61, %v2480_v46  ;;  %v359_v10 = vmul.f32 %v356_v62, %v2480_v46  ;;  %v379_v11 = vrot.slane %v317_v54, %v2490_v50  ;;  %v2518_v12 = vpop.permute.xlu1 %421  ;;  %v394_v15 = vrot.slane %v319_v53, %v2499_v56 }
  0x96   : > { %v360_v13 = vadd.f32 %v357_v0, %v337_v63  ;;  %v381_v17 = vmul.f32 %v375_v2, %v2472_v42  ;;  %v398_v18 = vrot.slane %v318_v55, %v2499_v56  ;;  %v380_v20 = vmul.f32 %v371_v1, %v2472_v42 }
  0x97   : > { %v361_v14 = vadd.f32 %v358_v9, %v338_v7  ;;  %v362_v16 = vadd.f32 %v359_v10, %v339_v8  ;;  %v402_v21 = vrot.slane %v317_v54, %v2499_v56  ;;  %v382_v22 = vmul.f32 %v379_v11, %v2472_v42 }
  0x98   : > { %v410_v19 = vpop.permute.xlu0 %409  ;;  %v383_v25 = vadd.f32 %v380_v20, %v360_v13  ;;  %v403_v28 = vmul.f32 %v394_v15, %v2511_v3  ;;  %v404_v29 = vmul.f32 %v398_v18, %v2511_v3 }
  0x99   : > { %v384_v23 = vadd.f32 %v381_v17, %v361_v14  ;;  %v412_v24 = vpop.permute.xlu1 %411  ;;  %v385_v27 = vadd.f32 %v382_v22, %v362_v16  ;;  %v405_v32 = vmul.f32 %v402_v21, %v2511_v3 }
  0x9a   : > { %v417_v26 = vsel %vm415_vm1, %v410_v19, %v412_v24  ;;  %v406_v41 = vadd.f32 %v403_v28, %v383_v25 }
  0x9b   : > { %v431_v30 = vrot.slane %v417_v26, %v2484_v48  ;;  %v454_v33 = vrot.slane %v417_v26, %v2487_v49  ;;  %v407_v36 = vadd.f32 %v404_v29, %v384_v23  ;;  %v408_v53 = vadd.f32 %v405_v32, %v385_v27 }
  0x9c   : > { %v414_v31 = vpop.permute.xlu0 %413  ;;  %v477_v58 = vrot.slane %v417_v26, %v2490_v50  ;;  %v500_v10 = vrot.slane %v417_v26, %v2499_v56  ;;  %v726_v29 = vsub.s32 4, %v2478_v45 }
  0x9d   : > { %v416_v34 = vsel %vm415_vm1, %v412_v24, %v414_v31  ;;  %v418_v35 = vsel %vm415_vm1, %v414_v31, %v410_v19  ;;  %v437_v37 = vmul.f32 %v431_v30, %v2518_v12  ;;  %v2541_v40 = vpop.permute.xlu1 %444 }
  0x9e   : > { %v427_v38 = vrot.slane %v418_v35, %v2484_v48  ;;  %v435_v39 = vrot.slane %v416_v34, %v2484_v48  ;;  %v450_v47 = vrot.slane %v418_v35, %v2487_v49  ;;  %v458_v51 = vrot.slane %v416_v34, %v2487_v49 }
  0x9f   : > { %v440_v52 = vadd.f32 %v437_v37, %v407_v36  ;;  %v460_v59 = vmul.f32 %v454_v33, %v2541_v40  ;;  %v473_v62 = vrot.slane %v418_v35, %v2490_v50  ;;  %v481_v63 = vrot.slane %v416_v34, %v2490_v50 }
  0xa0   : > { %v436_v54 = vmul.f32 %v427_v38, %v2518_v12  ;;  %v438_v55 = vmul.f32 %v435_v39, %v2518_v12  ;;  %v2547_v57 = vpop.permute.xlu0 %467  ;;  %v459_v1 = vmul.f32 %v450_v47, %v2541_v40  ;;  %v461_v2 = vmul.f32 %v458_v51, %v2541_v40 }
  0xa1   : > { %v2553_v0 = vpop.permute.xlu1 %490  ;;  %v463_v7 = vadd.f32 %v460_v59, %v440_v52  ;;  %v483_v8 = vmul.f32 %v477_v58, %v2547_v57  ;;  %v482_v15 = vmul.f32 %v473_v62, %v2547_v57  ;;  %v484_v16 = vmul.f32 %v481_v63, %v2547_v57 }
  0xa2   : > { %v439_v60 = vadd.f32 %v436_v54, %v406_v41  ;;  %v441_v61 = vadd.f32 %v438_v55, %v408_v53  ;;  %v506_v17 = vmul.f32 %v500_v10, %v2553_v0  ;;  %v496_v19 = vrot.slane %v418_v35, %v2499_v56 }
  0xa3   : > { %v486_v18 = vadd.f32 %v483_v8, %v463_v7  ;;  %v504_v20 = vrot.slane %v416_v34, %v2499_v56 }
  0xa4   : > { %v2558_v9 = vpop.permute.xlu0 %523  ;;  %v462_v11 = vadd.f32 %v459_v1, %v439_v60  ;;  %v464_v13 = vadd.f32 %v461_v2, %v441_v61  ;;  %v505_v25 = vmul.f32 %v496_v19, %v2553_v0  ;;  %v723_v60 = vrot.slane %v2313_v4, %v2484_v48 }
  0xa5   : > { %v512_v14 = vpop.permute.xlu1 %511  ;;  %v507_v26 = vmul.f32 %v504_v20, %v2553_v0  ;;  %v509_v30 = vadd.f32 %v506_v17, %v486_v18  ;;  %v2595_v61 = vrot.slane %v2313_v4, %v726_v29  ;;  %v764_v17 = vsub.s32 5, %v2478_v45 }
  0xa6   : > { %v485_v23 = vadd.f32 %v482_v15, %v462_v11  ;;  %v487_v24 = vadd.f32 %v484_v16, %v464_v13  ;;  %v731_v13 = vrot.slane %v2316_v5, %v2484_v48  ;;  %v761_v20 = vrot.slane %v2313_v4, %v2487_v49 }
  0xa8   : > { %v514_v21 = vpop.permute.xlu0 %513  ;;  %v508_v39 = vadd.f32 %v505_v25, %v485_v23  ;;  %v510_v41 = vadd.f32 %v507_v26, %v487_v24  ;;  %v2615_v25 = vrot.slane %v723_v60, %v2484_v48  ;;  %v2622_v29 = vrot.slane %v731_v13, %v2484_v48 }
  0xa9   : > { %v519_v22 = vsel %vm517_vm2, %v512_v14, %v514_v21  ;;  %v516_v28 = vpop.permute.xlu1 %515 }
  0xaa   : > { %v533_v27 = vrot.slane %v519_v22, %v2484_v48  ;;  %v556_v31 = vrot.slane %v519_v22, %v2487_v49  ;;  %v518_v32 = vsel %vm517_vm2, %v514_v21, %v516_v28  ;;  %v520_v33 = vsel %vm517_vm2, %v516_v28, %v512_v14 }
  0xab   : > { %v529_v35 = vrot.slane %v520_v33, %v2484_v48  ;;  %v537_v36 = vrot.slane %v518_v32, %v2484_v48  ;;  %v552_v37 = vrot.slane %v520_v33, %v2487_v49  ;;  %v560_v47 = vrot.slane %v518_v32, %v2487_v49 }
  0xac   : > { %v539_v34 = vmul.f32 %v533_v27, %v2558_v9  ;;  %v2582_v38 = vpop.permute.xlu0 %546  ;;  %v579_v52 = vrot.slane %v519_v22, %v2490_v50  ;;  %v575_v58 = vrot.slane %v520_v33, %v2490_v50  ;;  %v583_v8 = vrot.slane %v518_v32, %v2490_v50 }
  0xad   : > { %v538_v53 = vmul.f32 %v529_v35, %v2558_v9  ;;  %v540_v54 = vmul.f32 %v537_v36, %v2558_v9  ;;  %v2588_v55 = vpop.permute.xlu1 %569  ;;  %v562_v59 = vmul.f32 %v556_v31, %v2582_v38  ;;  %v561_v1 = vmul.f32 %v552_v37, %v2582_v38 }
  0xae   : > { %v542_v51 = vadd.f32 %v539_v34, %v509_v30  ;;  %v585_v2 = vmul.f32 %v579_v52, %v2588_v55  ;;  %v563_v10 = vmul.f32 %v560_v47, %v2582_v38  ;;  %v602_v14 = vrot.slane %v519_v22, %v2499_v56 }
  0xaf   : > { %v541_v62 = vadd.f32 %v538_v53, %v508_v39  ;;  %v543_v63 = vadd.f32 %v540_v54, %v510_v41  ;;  %v584_v19 = vmul.f32 %v575_v58, %v2588_v55  ;;  %v742_v22 = vrot.slane %v2595_v61, %v2484_v48 }
  0xb0   : > { %v2599_v7 = vpop.permute.xlu0 %592  ;;  %v565_v11 = vadd.f32 %v562_v59, %v542_v51  ;;  %v598_v26 = vrot.slane %v520_v33, %v2499_v56  ;;  %v586_v27 = vmul.f32 %v583_v8, %v2588_v55  ;;  %v606_v30 = vrot.slane %v518_v32, %v2499_v56 }
  0xb1   : > { %v564_v15 = vadd.f32 %v561_v1, %v541_v62  ;;  %v2606_v16 = vpop.permute.xlu1 %625  ;;  %v566_v18 = vadd.f32 %v563_v10, %v543_v63  ;;  %v608_v21 = vmul.f32 %v602_v14, %v2599_v7  ;;  %v2626_v34 = vrot.slane %v2313_v4, %v764_v17 }
  0xb2   : > { %v588_v24 = vadd.f32 %v585_v2, %v565_v11  ;;  %v769_v35 = vrot.slane %v2316_v5, %v2487_v49  ;;  %v802_v36 = vsub.s32 6, %v2478_v45  ;;  %v607_v37 = vmul.f32 %v598_v26, %v2599_v7 }
  0xb3   : > { %v587_v28 = vadd.f32 %v584_v19, %v564_v15  ;;  %v589_v39 = vadd.f32 %v586_v27, %v566_v18  ;;  %v2635_v41 = vrot.slane %v761_v20, %v2487_v49  ;;  %v609_v32 = vmul.f32 %v606_v30, %v2599_v7 }
  0xb4   : > { %v614_v23 = vpop.permute.xlu0 %613  ;;  %v611_v47 = vadd.f32 %v608_v21, %v588_v24  ;;  %v799_v53 = vrot.slane %v2313_v4, %v2490_v50  ;;  %v840_v24 = vsub.s32 7, %v2478_v45 }
  0xb5   : > { %v616_v31 = vpop.permute.xlu1 %615  ;;  %v610_v58 = vadd.f32 %v607_v37, %v587_v28  ;;  %v612_v10 = vadd.f32 %v609_v32, %v589_v39 }
  0xb6   : > { %v621_v33 = vsel %vm3412_vm3, %v614_v23, %v616_v31 }
  0xb7   : > { %v635_v51 = vrot.slane %v621_v33, %v2484_v48  ;;  %v658_v54 = vrot.slane %v621_v33, %v2487_v49  ;;  %v681_v8 = vrot.slane %v621_v33, %v2490_v50  ;;  %v704_v20 = vrot.slane %v621_v33, %v2499_v56 }
  0xb8   : > { %v618_v52 = vpop.permute.xlu0 %617 }
  0xb9   : > { %v620_v59 = vsel %vm3412_vm3, %v616_v31, %v618_v52  ;;  %v622_v60 = vsel %vm3412_vm3, %v618_v52, %v614_v23  ;;  %v641_v61 = vmul.f32 %v635_v51, %v2606_v16  ;;  %v2650_v2 = vpop.permute.xlu1 %648 }
  0xba   : > { %v631_v62 = vrot.slane %v622_v60, %v2484_v48  ;;  %v639_v63 = vrot.slane %v620_v59, %v2484_v48  ;;  %v654_v1 = vrot.slane %v622_v60, %v2487_v49  ;;  %v662_v11 = vrot.slane %v620_v59, %v2487_v49 }
  0xbb   : > { %v677_v13 = vrot.slane %v622_v60, %v2490_v50  ;;  %v644_v14 = vadd.f32 %v641_v61, %v611_v47  ;;  %v685_v18 = vrot.slane %v620_v59, %v2490_v50  ;;  %v664_v23 = vmul.f32 %v658_v54, %v2650_v2 }
  0xbc   : > { %v640_v15 = vmul.f32 %v631_v62, %v2606_v16  ;;  %v642_v17 = vmul.f32 %v639_v63, %v2606_v16  ;;  %v2658_v19 = vpop.permute.xlu0 %671  ;;  %v663_v21 = vmul.f32 %v654_v1, %v2650_v2  ;;  %v665_v28 = vmul.f32 %v662_v11, %v2650_v2 }
  0xbd   : > { %v687_v30 = vmul.f32 %v681_v8, %v2658_v19  ;;  %v2666_v31 = vpop.permute.xlu1 %694  ;;  %v700_v37 = vrot.slane %v622_v60, %v2499_v56  ;;  %v708_v39 = vrot.slane %v620_v59, %v2499_v56  ;;  %v667_v32 = vadd.f32 %v664_v23, %v644_v14 }
  0xbe   : > { %v643_v26 = vadd.f32 %v640_v15, %v610_v58  ;;  %v645_v27 = vadd.f32 %v642_v17, %v612_v10  ;;  %v710_v33 = vmul.f32 %v704_v20, %v2666_v31  ;;  %v686_v52 = vmul.f32 %v677_v13, %v2658_v19 }
  0xbf   : > { %v688_v45 = vmul.f32 %v685_v18, %v2658_v19  ;;  %v690_v58 = vadd.f32 %v687_v30, %v667_v32  ;;  %v780_v62 = vrot.slane %v2626_v34, %v2487_v49  ;;  %v803_v60 = vrot.slane %v2313_v4, %v802_v36 }
  0xc0   : > { %v666_v47 = vadd.f32 %v663_v21, %v643_v26  ;;  %v668_v51 = vadd.f32 %v665_v28, %v645_v27  ;;  %v2673_v54 = vpop.permute.xlu0 %717  ;;  %v709_v1 = vmul.f32 %v700_v37, %v2666_v31  ;;  %v711_v8 = vmul.f32 %v708_v39, %v2666_v31 }
  0xc1   : > { %v748_v61 = vmul.f32 %v742_v22, %v2673_v54  ;;  %v2681_v10 = vpop.permute.xlu1 %755  ;;  %v713_v11 = vadd.f32 %v710_v33, %v690_v58  ;;  %v784_v13 = vrot.slane %v769_v35, %v2487_v49  ;;  %v807_v14 = vrot.slane %v2316_v5, %v2490_v50 }
  0xc2   : > { %v689_v59 = vadd.f32 %v686_v52, %v666_v47  ;;  %v691_v63 = vadd.f32 %v688_v45, %v668_v51  ;;  %v814_v22 = vrot.slane %v799_v53, %v2490_v50  ;;  %v747_v36 = vmul.f32 %v2615_v25, %v2673_v54 }
  0xc3   : > { %v749_v17 = vmul.f32 %v2622_v29, %v2673_v54  ;;  %v751_v20 = vadd.f32 %v748_v61, %v713_v11  ;;  %v786_v21 = vmul.f32 %v780_v62, %v2681_v10  ;;  %v818_v35 = vrot.slane %v803_v60, %v2490_v50 }
  0xc4   : > { %v712_v15 = vadd.f32 %v709_v1, %v689_v59  ;;  %v714_v34 = vadd.f32 %v711_v8, %v691_v63  ;;  %v2691_v18 = vpop.permute.xlu0 %793  ;;  %v841_v23 = vrot.slane %v2313_v4, %v840_v24  ;;  %v785_v53 = vmul.f32 %v2635_v41, %v2681_v10 }
  0xc5   : > { %v837_v25 = vrot.slane %v2313_v4, %v2499_v56  ;;  %v2700_v28 = vpop.permute.xlu1 %831  ;;  %v787_v29 = vmul.f32 %v784_v13, %v2681_v10  ;;  %v822_v30 = vrot.slane %v807_v14, %v2490_v50  ;;  %v845_v37 = vrot.slane %v2316_v5, %v2499_v56 }
  0xc6   : > { %v750_v26 = vadd.f32 %v747_v36, %v712_v15  ;;  %v752_v27 = vadd.f32 %v749_v17, %v714_v34  ;;  %v789_v24 = vadd.f32 %v786_v21, %v751_v20  ;;  %v824_v47 = vmul.f32 %v818_v35, %v2691_v18 }
  0xc7   : > { %v856_v41 = vrot.slane %v841_v23, %v2499_v56  ;;  %v823_v4 = vmul.f32 %v814_v22, %v2691_v18  ;;  %v852_v51 = vrot.slane %v837_v25, %v2499_v56  ;;  %v825_v45 = vmul.f32 %v822_v30, %v2691_v18 }
  0xc8   : > { %v788_v39 = vadd.f32 %v785_v53, %v750_v26  ;;  %v2706_v32 = vpop.permute.xlu0 %879  ;;  %v790_v33 = vadd.f32 %v787_v29, %v752_v27  ;;  %v860_v5 = vrot.slane %v845_v37, %v2499_v56  ;;  %v827_v59 = vadd.f32 %v824_v47, %v789_v24 }
  0xc9   : > { %v868_v52 = vpop.permute.xlu1 %867  ;;  %v862_v62 = vmul.f32 %v856_v41, %v2700_v28  ;;  %v861_v1 = vmul.f32 %v852_v51, %v2700_v28  ;;  %v2744_v51 = vadd.s32 128, %v2476_v44 }
  0xca   : > { %v826_v61 = vadd.f32 %v823_v4, %v788_v39  ;;  %v828_v63 = vadd.f32 %v825_v45, %v790_v33  ;;  %v863_v13 = vmul.f32 %v860_v5, %v2700_v28 }
  0xcb   : > { %v865_v35 = vadd.f32 %v862_v62, %v827_v59  ;;  %v2752_v59 = vadd.s32 256, %v2476_v44 }
  0xcc   : > { %v870_v58 = vpop.permute.xlu0 %869  ;;  %v864_v34 = vadd.f32 %v861_v1, %v826_v61  ;;  %v866_v23 = vadd.f32 %v863_v13, %v828_v63 }
  0xcd   : > { %v875_v60 = vsel %vm3411_vm4, %v868_v52, %v870_v58  ;;  %v872_v11 = vpop.permute.xlu1 %871 }
  0xce   : > { %v885_v8 = vrot.slane %v875_v60, %v2484_v48  ;;  %v908_v14 = vrot.slane %v875_v60, %v2487_v49  ;;  %v874_v22 = vsel %vm3411_vm4, %v870_v58, %v872_v11  ;;  %v876_v15 = vsel %vm3411_vm4, %v872_v11, %v868_v52 }
  0xcf   : > { %v889_v17 = vrot.slane %v874_v22, %v2484_v48  ;;  %v893_v20 = vrot.slane %v876_v15, %v2484_v48  ;;  %v912_v26 = vrot.slane %v874_v22, %v2487_v49  ;;  %v916_v29 = vrot.slane %v876_v15, %v2487_v49 }
  0xd0   : > { %v894_v36 = vmul.f32 %v885_v8, %v2706_v32  ;;  %v2729_v21 = vpop.permute.xlu0 %902  ;;  %v931_v39 = vrot.slane %v875_v60, %v2490_v50  ;;  %v935_v41 = vrot.slane %v874_v22, %v2490_v50  ;;  %v939_v52 = vrot.slane %v876_v15, %v2490_v50 }
  0xd1   : > { %v895_v53 = vmul.f32 %v889_v17, %v2706_v32  ;;  %v896_v25 = vmul.f32 %v893_v20, %v2706_v32  ;;  %v2735_v30 = vpop.permute.xlu1 %925  ;;  %v917_v37 = vmul.f32 %v908_v14, %v2729_v21  ;;  %v918_v4 = vmul.f32 %v912_v26, %v2729_v21 }
  0xd2   : > { %v897_v27 = vadd.f32 %v894_v36, %v864_v34  ;;  %v919_v45 = vmul.f32 %v916_v29, %v2729_v21  ;;  %v940_v58 = vmul.f32 %v931_v39, %v2735_v30  ;;  %v954_v63 = vrot.slane %v875_v60, %v2499_v56 }
  0xd3   : > { %v898_v24 = vadd.f32 %v895_v53, %v865_v35  ;;  %v899_v33 = vadd.f32 %v896_v25, %v866_v23  ;;  %v3399_v11 = vcvt.s32.f32 %v2476_v44  ;;  %v941_v13 = vmul.f32 %v935_v41, %v2735_v30 }
  0xd4   : > { %v2739_v47 = vpop.permute.xlu0 %948  ;;  %v920_v5 = vadd.f32 %v917_v37, %v897_v27  ;;  %v3397_v14 = vcvt.s32.f32 %v2744_v51  ;;  %v958_v34 = vrot.slane %v874_v22, %v2499_v56  ;;  %v942_v36 = vmul.f32 %v939_v52, %v2735_v30 }
  0xd5   : > { %v2749_v61 = vpop.permute.xlu1 %981  ;;  %v921_v62 = vadd.f32 %v918_v4, %v898_v24  ;;  %v922_v1 = vadd.f32 %v919_v45, %v899_v33  ;;  %v963_v17 = vmul.f32 %v954_v63, %v2739_v47  ;;  %v962_v60 = vrot.slane %v876_v15, %v2499_v56 }
  0xd6   : > { %v943_v20 = vadd.f32 %v940_v58, %v920_v5  ;;  %v3398_v27 = vcvt.s32.f32 %v2752_v59  ;;  %v964_v53 = vmul.f32 %v958_v34, %v2739_v47  ;;  %v185_v37 = vadd.f32 0.5, %v3399_v11 }
  0xd7   : > { %v944_v26 = vadd.f32 %v941_v13, %v921_v62  ;;  %v945_v22 = vadd.f32 %v942_v36, %v922_v1  ;;  %v965_v39 = vmul.f32 %v962_v60, %v2739_v47  ;;  %v186_v1 = vadd.f32 0.5, %v3397_v14 }
  0xd8   : > { %v970_v8 = vpop.permute.xlu0 %969  ;;  %v966_v41 = vadd.f32 %v963_v17, %v943_v20  ;;  %v187_v60 = vadd.f32 0.5, %v3398_v27 }
  0xd9   : > { %v972_v35 = vpop.permute.xlu1 %971  ;;  %v967_v58 = vadd.f32 %v964_v53, %v944_v26  ;;  %v968_v34 = vadd.f32 %v965_v39, %v945_v22  ;;  %v188_v26 = vmul.f32 0.055555556, %v185_v37  ;;  %v189_v14 = vmul.f32 0.055555556, %v186_v1 }
  0xda   : > { %v977_v23 = vsel %vm3410_vm5, %v970_v8, %v972_v35 }
  0xdb   : > { %v987_v25 = vrot.slane %v977_v23, %v2484_v48  ;;  %v1010_v24 = vrot.slane %v977_v23, %v2487_v49  ;;  %v1033_v20 = vrot.slane %v977_v23, %v2490_v50  ;;  %v1056_v37 = vrot.slane %v977_v23, %v2499_v56 }
  0xdc   : > { %v974_v29 = vpop.permute.xlu0 %973  ;;  %v2804_v27 = vfloor.f32 %v188_v26 }
  0xdd   : > { %v976_v15 = vsel %vm3410_vm5, %v972_v35, %v974_v29  ;;  %v978_v33 = vsel %vm3410_vm5, %v974_v29, %v970_v8  ;;  %v996_v4 = vmul.f32 %v987_v25, %v2749_v61  ;;  %v2779_v5 = vpop.permute.xlu1 %1004 }
  0xde   : > { %v991_v52 = vrot.slane %v976_v15, %v2484_v48  ;;  %v995_v45 = vrot.slane %v978_v33, %v2484_v48  ;;  %3439 = vst [vmem:[#allocation3_spill] sm:$0xff] %v2779_v5  ;;  %v1014_v62 = vrot.slane %v976_v15, %v2487_v49  ;;  %v1018_v63 = vrot.slane %v978_v33, %v2487_v49 }
  0xdf   : > { %v999_v13 = vadd.f32 %v996_v4, %v966_v41  ;;  %v1019_v35 = vmul.f32 %v1010_v24, %v2779_v5  ;;  %v1037_v29 = vrot.slane %v976_v15, %v2490_v50  ;;  %v1041_v22 = vrot.slane %v978_v33, %v2490_v50 }
  0xe0   : > { %v997_v8 = vmul.f32 %v991_v52, %v2749_v61  ;;  %v998_v36 = vmul.f32 %v995_v45, %v2749_v61  ;;  %v2787_v17 = vpop.permute.xlu0 %1027  ;;  %v1020_v41 = vmul.f32 %v1014_v62, %v2779_v5  ;;  %v1021_v4 = vmul.f32 %v1018_v63, %v2779_v5 }
  0xe1   : > { %3440 = vst [vmem:[#allocation4_spill] sm:$0xff] %v2787_v17  ;;  %v2795_v39 = vpop.permute.xlu1 %1050  ;;  %v1022_v52 = vadd.f32 %v1019_v35, %v999_v13  ;;  %v1042_v45 = vmul.f32 %v1033_v20, %v2787_v17  ;;  %v1043_v62 = vmul.f32 %v1037_v29, %v2787_v17  ;;  %v1044_v63 = vmul.f32 %v1041_v22, %v2787_v17 }
  0xe2   : > { %v1000_v53 = vadd.f32 %v997_v8, %v967_v58  ;;  %v1001_v25 = vadd.f32 %v998_v36, %v968_v34  ;;  %3441 = vst [vmem:[#allocation5_spill] sm:$0xff] %v2795_v39  ;;  %v190_v8 = vmul.f32 0.055555556, %v187_v60  ;;  %v1065_v13 = vmul.f32 %v1056_v37, %v2795_v39 }
  0xe3   : > { %v1045_v20 = vadd.f32 %v1042_v45, %v1022_v52  ;;  %v1060_v35 = vrot.slane %v976_v15, %v2499_v56  ;;  %v1064_v1 = vrot.slane %v978_v33, %v2499_v56  ;;  %v194_v15 = vmul.f32 18.0, %v2804_v27 }
  0xe4   : > { %v2800_v24 = vpop.permute.xlu0 %1083  ;;  %v1023_v58 = vadd.f32 %v1020_v41, %v1000_v53  ;;  %v1024_v34 = vadd.f32 %v1021_v4, %v1001_v25  ;;  %v2811_v53 = vfloor.f32 %v189_v14  ;;  %v2815_v41 = vfloor.f32 %v190_v8 }
  0xe5   : > { %3442 = vst [vmem:[#allocation6_spill] sm:$0xff] %v2800_v24  ;;  %v1072_v36 = vpop.permute.xlu1 %1071  ;;  %v1066_v29 = vmul.f32 %v1060_v35, %v2795_v39  ;;  %v1067_v22 = vmul.f32 %v1064_v1, %v2795_v39  ;;  %v1068_v33 = vadd.f32 %v1065_v13, %v1045_v20  ;;  %vm200_vm8 = vcmp.ge.f32.partialorder %v2804_v27, 1.0 }
  0xe6   : > { %v1046_v25 = vadd.f32 %v1043_v62, %v1023_v58  ;;  %v1047_v26 = vadd.f32 %v1044_v63, %v1024_v34  ;;  %v195_v1 = vmul.f32 18.0, %v2811_v53  ;;  %vm203_vm9 = vcmp.le.f32.partialorder %v2804_v27, 16.0 }
  0xe7   : > { %vm201_vm10 = vcmp.ge.f32.partialorder %v2811_v53, 1.0  ;;  %vm202_vm11 = vcmp.ge.f32.partialorder %v2815_v41, 1.0  ;;  %vm204_vm12 = vcmp.le.f32.partialorder %v2811_v53, 16.0  ;;  %vm205_vm13 = vcmp.le.f32.partialorder %v2815_v41, 16.0  ;;  %vm2900_vm3 = vmand %vm200_vm8, %vm203_vm9 }
  0xe8   : > { %v1074_v23 = vpop.permute.xlu0 %1073  ;;  %v1069_v13 = vadd.f32 %v1066_v29, %v1046_v25  ;;  %v1070_v20 = vadd.f32 %v1067_v22, %v1047_v26  ;;  %v196_v25 = vmul.f32 18.0, %v2815_v41  ;;  %vm2924_vm8 = vmand %vm202_vm11, %vm205_vm13 }
  0xe9   : > { %v1079_v60 = vsel %vm3409_vm6, %v1072_v36, %v1074_v23  ;;  %v1076_v52 = vpop.permute.xlu1 %1075 }
  0xea   : > { %v1089_v4 = vrot.slane %v1079_v60, %v2484_v48  ;;  %v1112_v14 = vrot.slane %v1079_v60, %v2487_v49  ;;  %v1078_v45 = vsel %vm3409_vm6, %v1074_v23, %v1076_v52  ;;  %v1080_v37 = vsel %vm3409_vm6, %v1076_v52, %v1072_v36 }
  0xeb   : > { %v1093_v34 = vrot.slane %v1078_v45, %v2484_v48  ;;  %v1097_v8 = vrot.slane %v1080_v37, %v2484_v48  ;;  %v1116_v62 = vrot.slane %v1078_v45, %v2487_v49  ;;  %v1120_v35 = vrot.slane %v1080_v37, %v2487_v49 }
  0xec   : > { %v1098_v58 = vmul.f32 %v1089_v4, %v2800_v24  ;;  %v2830_v63 = vpop.permute.xlu0 %1106  ;;  %v1135_v36 = vrot.slane %v1079_v60, %v2490_v50  ;;  %v1139_v6 = vrot.slane %v1078_v45, %v2490_v50 }
  0xed   : > { %v1099_v4 = vmul.f32 %v1093_v34, %v2800_v24  ;;  %v1100_v52 = vmul.f32 %v1097_v8, %v2800_v24  ;;  %v2838_v11 = vpop.permute.xlu1 %1129  ;;  %v1121_v39 = vmul.f32 %v1112_v14, %v2830_v63  ;;  %v1122_v22 = vmul.f32 %v1116_v62, %v2830_v63 }
  0xee   : > { %v1101_v23 = vadd.f32 %v1098_v58, %v1068_v33  ;;  %3443 = vst [vmem:[#allocation7_spill] sm:$0xff] %v2838_v11  ;;  %v1144_v33 = vmul.f32 %v1135_v36, %v2838_v11  ;;  %v1143_v34 = vrot.slane %v1080_v37, %v2490_v50  ;;  %v1123_v8 = vmul.f32 %v1120_v35, %v2830_v63 }
  0xef   : > { %v1102_v26 = vadd.f32 %v1099_v4, %v1069_v13  ;;  %v1103_v29 = vadd.f32 %v1100_v52, %v1070_v20  ;;  %v1158_v14 = vrot.slane %v1079_v60, %v2499_v56  ;;  %v3446_v13 = vcvt.s32.f32 %v2476_v44 }
  0xf0   : > { %v2846_v58 = vpop.permute.xlu0 %1152  ;;  %v1124_v24 = vadd.f32 %v1121_v39, %v1101_v23  ;;  %v3447_v62 = vcvt.s32.f32 %v2744_v51  ;;  %v1145_v52 = vmul.f32 %v1139_v6, %v2838_v11  ;;  %v3448_v39 = vcvt.s32.f32 %v2752_v59 }
  0xf1   : > { %3444 = vst [vmem:[#allocation8_spill] sm:$0xff] %v2846_v58  ;;  %v1125_v17 = vadd.f32 %v1122_v22, %v1102_v26  ;;  %v2852_v5 = vpop.permute.xlu1 %1185  ;;  %v2856_v20 = vsub.f32 %v3446_v13, %v194_v15  ;;  %v1126_v4 = vadd.f32 %v1123_v8, %v1103_v29  ;;  %v1167_v60 = vmul.f32 %v1158_v14, %v2846_v58 }
  0xf2   : > { %3445 = vst [vmem:[#allocation9_spill] sm:$0xff] %v2852_v5  ;;  %v2860_v36 = vsub.f32 %v3447_v62, %v195_v1  ;;  %v2865_v35 = vsub.f32 %v3448_v39, %v196_v25  ;;  %v1147_v26 = vadd.f32 %v1144_v33, %v1124_v24  ;;  %v1162_v51 = vrot.slane %v1078_v45, %v2499_v56 }
  0xf3   : > { %v1146_v15 = vmul.f32 %v1143_v34, %v2838_v11  ;;  %v1148_v1 = vadd.f32 %v1145_v52, %v1125_v17  ;;  %v1166_v6 = vrot.slane %v1080_v37, %v2499_v56  ;;  %vm209_vm14 = vcmp.ge.f32.partialorder %v2856_v20, 1.0 }
  0xf4   : > { %v1174_v23 = vpop.permute.xlu0 %1173  ;;  %vm210_vm15 = vcmp.ge.f32.partialorder %v2860_v36, 1.0  ;;  %vm215_vm6 = vcmp.le.f32.partialorder %v2856_v20, 16.0  ;;  %v1168_v24 = vmul.f32 %v1162_v51, %v2846_v58  ;;  %vm211_vm5 = vcmp.ge.f32.partialorder %v2865_v35, 1.0  ;;  %vm2935_vm9 = vmand %vm2900_vm3, %vm209_vm14 }
  0xf5   : > { %v1176_v59 = vpop.permute.xlu1 %1175  ;;  %v1149_v45 = vadd.f32 %v1146_v15, %v1126_v4  ;;  %v1169_v17 = vmul.f32 %v1166_v6, %v2846_v58  ;;  %v1170_v29 = vadd.f32 %v1167_v60, %v1147_v26  ;;  %vm216_vm4 = vcmp.le.f32.partialorder %v2860_v36, 16.0  ;;  %vm214_vm3 = vmand %vm2924_vm8, %vm211_vm5 }
  0xf6   : > { %v1181_v25 = vsel %vm3413_vm7, %v1174_v23, %v1176_v59  ;;  %v1171_v34 = vadd.f32 %v1168_v24, %v1148_v1  ;;  %v2264_v20 = vmov 0.0  }
  0xf7   : > { %v1191_v37 = vrot.slane %v1181_v25, %v2484_v48  ;;  %v1214_v33 = vrot.slane %v1181_v25, %v2487_v49  ;;  %v1172_v26 = vadd.f32 %v1169_v17, %v1149_v45  ;;  %v1260_v53 = vrot.slane %v1181_v25, %v2499_v56 }
  0xf8   : > { %v1178_v22 = vpop.permute.xlu0 %1177 }
  0xf9   : > { %v1180_v8 = vsel %vm3413_vm7, %v1176_v59, %v1178_v22  ;;  %v1182_v14 = vsel %vm3413_vm7, %v1178_v22, %v1174_v23  ;;  %v1200_v13 = vmul.f32 %v1191_v37, %v2852_v5  ;;  %v2894_v39 = vpop.permute.xlu1 %1208  ;;  %v1237_v23 = vrot.slane %v1181_v25, %v2490_v50  ;;  %vm2911_vm7 = vmand %vm201_vm10, %vm204_vm12 }
  0xfa   : > { %v1195_v62 = vrot.slane %v1180_v8, %v2484_v48  ;;  %v1199_v4 = vrot.slane %v1182_v14, %v2484_v48  ;;  %v1218_v52 = vrot.slane %v1180_v8, %v2487_v49  ;;  %3449 = vst [vmem:[#allocation10_spill] sm:$0xff] %v2894_v39  ;;  %v1222_v51 = vrot.slane %v1182_v14, %v2487_v49  ;;  %vm213_vm11 = vmand %vm2911_vm7, %vm210_vm15 }
  0xfb   : > { %v1241_v15 = vrot.slane %v1180_v8, %v2490_v50  ;;  %v1203_v27 = vadd.f32 %v1200_v13, %v1170_v29  ;;  %v1245_v24 = vrot.slane %v1182_v14, %v2490_v50  ;;  %v1223_v29 = vmul.f32 %v1214_v33, %v2894_v39  ;;  %vm218_vm7 = vmand %vm2935_vm9, %vm215_vm6 }
  0xfc   : > { %v1201_v6 = vmul.f32 %v1195_v62, %v2852_v5  ;;  %v1202_v59 = vmul.f32 %v1199_v4, %v2852_v5  ;;  %v2918_v45 = vpop.permute.xlu0 %1231  ;;  %vm217_vm10 = vcmp.le.f32.partialorder %v2865_v35, 16.0  ;;  %v1224_v62 = vmul.f32 %v1218_v52, %v2894_v39  ;;  %vm219_vm12 = vmand %vm213_vm11, %vm216_vm4 }
  0xfd   : > { %3454 = vst [vmem:[#allocation11_spill] sm:$0xff] %v2918_v45  ;;  %v1246_v37 = vmul.f32 %v1237_v23, %v2918_v45  ;;  %v1225_v25 = vmul.f32 %v1222_v51, %v2894_v39  ;;  %v2942_v4 = vpop.permute.xlu1 %1254  ;;  %v1264_v33 = vrot.slane %v1180_v8, %v2499_v56  ;;  %v1268_v60 = vrot.slane %v1182_v14, %v2499_v56  ;;  %vm220_vm5 = vmand %vm214_vm3, %vm217_vm10 }
  0xfe   : > { %v1204_v41 = vadd.f32 %v1201_v6, %v1171_v34  ;;  %v1205_v13 = vadd.f32 %v1202_v59, %v1172_v26  ;;  %3459 = vst [vmem:[#allocation12_spill] sm:$0xff] %v2942_v4  ;;  %v1226_v23 = vadd.f32 %v1223_v29, %v1203_v27  ;;  %v1269_v5 = vmul.f32 %v1260_v53, %v2942_v4 }
  0xff   : > { %v1247_v52 = vmul.f32 %v1241_v15, %v2918_v45  ;;  %v1248_v26 = vmul.f32 %v1245_v24, %v2918_v45  ;;  %v1270_v51 = vmul.f32 %v1264_v33, %v2942_v4  ;;  %v1271_v15 = vmul.f32 %v1268_v60, %v2942_v4 }
 0x100   : > { %v1227_v34 = vadd.f32 %v1224_v62, %v1204_v41  ;;  %v1228_v8 = vadd.f32 %v1225_v25, %v1205_v13  ;;  %v1249_v14 = vadd.f32 %v1246_v37, %v1226_v23  ;;  %v2967_v59 = vpop.permute.xlu0 %1277  ;;  %v2969_v24 = vsel %vm218_vm7, 1.0, %v2264_v20 }
 0x101   : > { %3460 = vst [vmem:[#allocation13_spill] sm:$0xff] %v2967_v59  ;;  %3461 = vst [vmem:[#allocation14_spill] sm:$0xff] %v2969_v24  ;;  %v2971_v36 = vsel %vm219_vm12, 1.0, %v2264_v20  ;;  %v2973_v29 = vsel %vm220_vm5, 1.0, %v2264_v20  ;;  %vm1286_vm4 = vcmask 1043456   ;;  %vm3471_vm15 = vcmp.lt.s32.totalorder %v2476_v44, 127 }
 0x102   : > { %v1250_v1 = vadd.f32 %v1247_v52, %v1227_v34  ;;  %v1251_v27 = vadd.f32 %v1248_v26, %v1228_v8  ;;  %v1272_v6 = vadd.f32 %v1269_v5, %v1249_v14  ;;  %3462 = vst [vmem:[#allocation15_spill] sm:$0xff] %v2971_v36  ;;  %3463 = vst [vmem:[#allocation16_spill] sm:$0xff] %v2973_v29  ;;  %vm3475_vm10 = vcmp.lt.s32.totalorder %v2476_v44, 111 }
 0x103   : > { %vm3472_vm8 = vmmov %vm3471_vm15  ;;  %vm3481_vm7 = vcmp.lt.s32.totalorder %v2476_v44, 110 }
 0x104   : > { %v1273_v17 = vadd.f32 %v1270_v51, %v1250_v1  ;;  %v1274_v53 = vadd.f32 %v1271_v15, %v1251_v27  ;;  %v1280_v37 = vadd.f32 %v2967_v59, %v1272_v6  ;;  %vm3473_vm9 = vmmov %vm3472_vm8 }
 0x105   : > { %vm3476_vm11 = vmmov %vm3475_vm10 }
 0x106   : > { %v1281_v35 = vadd.f32 %v2967_v59, %v1273_v17  ;;  %v1282_v22 = vadd.f32 %v2967_v59, %v1274_v53  ;;  %v1283_v41 = vmul.f32 %v2969_v24, %v1280_v37  ;;  %vm3477_vm3 = vmmov %vm3475_vm10 }
 0x107   : > { %vm3483_vm12 = vmmov %vm3481_vm7 }
 0x108   : > { %v1284_v5 = vmul.f32 %v2971_v36, %v1281_v35  ;;  %v1285_v13 = vmul.f32 %v2973_v29, %v1282_v22  ;;  %v1287_v62 = vsel %vm1286_vm4, %v1283_v41, 0.0  ;;  %vm3484_vm5 = vmmov %vm3481_vm7 }
 0x10a   : > { %v1288_v25 = vsel %vm1286_vm4, %v1284_v5, 0.0  ;;  %v1290_v60 = vsel %vm1286_vm4, %v1285_v13, 0.0 }
 0x10b   : > { %v1289_v33 = vadd.f32 %v1288_v25, %v1287_v62  ;;  %v2996_v25 = vld [vmem:[%s3395_s2 + $0x4] sm:$0xf] }
 0x10c   : > { %3464 = vst [vmem:[#allocation17_spill] sm:$0xff] %v2996_v25 }
 0x10d   : > { %v1291_v23 = vadd.f32 %v1290_v60, %v1289_v33 }
 0x10f   : > { %1292 = vadd.xlane.f32.xlu1 %v1291_v23 }
 0x198   : > { %v1293_v34 = vpop.xlane.xlu1 %1292 }
 0x199   : > { %v1294_v52 = vmul.f32 0.00390625, %v1293_v34 }
 0x19b   : > { %v1295_v26 = vsub.f32 %v1280_v37, %v1294_v52  ;;  %v1296_v8 = vsub.f32 %v1281_v35, %v1294_v52  ;;  %v1297_v14 = vsub.f32 %v1282_v22, %v1294_v52  ;;  %v2178_v37 = vld [vmem:[%s3395_s2 + $0x8] sm:$0xf] }
 0x19d   : > { %v1298_v51 = vmul.f32 %v2969_v24, %v1295_v26  ;;  %v1299_v1 = vmul.f32 %v2971_v36, %v1296_v8  ;;  %v1300_v27 = vmul.f32 %v2973_v29, %v1297_v14 }
 0x19f   : > { %v1301_v15 = vmul.f32 %v1298_v51, %v1298_v51  ;;  %v1302_v6 = vmul.f32 %v1299_v1, %v1299_v1  ;;  %v1303_v20 = vmul.f32 %v1300_v27, %v1300_v27 }
 0x1a1   : > { %v1304_v17 = vsel %vm1286_vm4, %v1301_v15, 0.0  ;;  %v1305_v53 = vsel %vm1286_vm4, %v1302_v6, 0.0  ;;  %v1307_v5 = vsel %vm1286_vm4, %v1303_v20, 0.0 }
 0x1a2   : > { %v1306_v41 = vadd.f32 %v1305_v53, %v1304_v17 }
 0x1a4   : > { %v1308_v13 = vadd.f32 %v1307_v5, %v1306_v41 }
 0x1a6   : > { %1309 = vadd.xlane.f32.xlu0 %v1308_v13 }
 0x1bc   : > { %229 = vperm.xlu0 %2238, %v2178_v37  }
 0x22f   : > { %v1310_v35 = vpop.xlane.xlu0 %1309 }
 0x230   : > { %v1311_v22 = vmul.f32 0.00390625, %v1310_v35 }
 0x232   : > { %v1312_v62 = vadd.f32 1e-05, %v1311_v22 }
 0x234   : > { %2241 = vrsqrt.f32 %v1312_v62 }
 0x237   : > { %v230_v23 = vpop.permute.xlu0 %229 }
 0x238   : > { %v3000_v34 = vmul.f32 %v2969_v24, %v230_v23  ;;  %v3003_v52 = vmul.f32 %v2971_v36, %v230_v23  ;;  %v3006_v8 = vmul.f32 %v2973_v29, %v230_v23 }
 0x23a   : > { %3465 = vst [vmem:[#allocation18_spill] sm:$0xff] %v3000_v34  ;;  %3466 = vst [vmem:[#allocation19_spill] sm:$0xff] %v3003_v52 }
 0x23b   : > { %3467 = vst [vmem:[#allocation20_spill] sm:$0xff] %v3006_v8 }
 0x241   : > { %v2242_v33 = vpop.eup %2241 }
 0x242   : > { %v1314_v60 = vmul.f32 %v2242_v33, %v2996_v25 }
 0x244   : > { %1317 = vperm.xlu1 %2239, %v1314_v60  }
 0x2bf   : > { %v1318_v26 = vpop.permute.xlu1 %1317 }
 0x2c0   : > { %v1320_v14 = vmul.f32 %v1318_v26, %v1298_v51  ;;  %v1321_v15 = vmul.f32 %v1318_v26, %v1299_v1  ;;  %v1322_v6 = vmul.f32 %v1318_v26, %v1300_v27 }
 0x2c2   : > { %v1323_v20 = vadd.f32 %v1320_v14, %v3000_v34  ;;  %v1324_v17 = vadd.f32 %v1321_v15, %v3003_v52  ;;  %v1325_v53 = vadd.f32 %v1322_v6, %v3006_v8 }
 0x2c4   : > { %vm1326_vm6 = vcmp.ge.f32.partialorder %v1323_v20, 0.0  ;;  %vm1327_vm13 = vcmp.ge.f32.partialorder %v1324_v17, 0.0  ;;  %v1329_v41 = vmul.f32 0.01, %v1323_v20  ;;  %v1330_v5 = vmul.f32 0.01, %v1324_v17 }
 0x2c5   : > { %v1331_v13 = vmul.f32 0.01, %v1325_v53  ;;  %vm1328_vm14 = vcmp.ge.f32.partialorder %v1325_v53, 0.0 }
 0x2c6   : > { %v1332_v37 = vsel %vm1326_vm6, %v1323_v20, %v1329_v41  ;;  %v3011_v35 = vsel %vm1327_vm13, %v1324_v17, %v1330_v5  ;;  %vm3485_vm6 = vcmp.lt.s32.totalorder %v2476_v44, 109 }
 0x2c7   : > { %1335 = vrot.lane.b32.xlu1 %v1332_v37, %s2256_s24  ;;  %1337 = vrot.lane.b32.xlu0 %v3011_v35, %s2256_s24  ;;  %v3016_v51 = vsel %vm1328_vm14, %v1325_v53, %v1331_v13  ;;  %v1659_v1 = vrot.slane %v1332_v37, %v2484_v48  ;;  %v1677_v27 = vrot.slane %v1332_v37, %v2487_v49  ;;  %vm3489_vm13 = vmmov %vm3485_vm6 }
 0x2c8   : > { %v1663_v22 = vrot.slane %v3011_v35, %v2484_v48  ;;  %v1667_v62 = vrot.slane %v3016_v51, %v2484_v48  ;;  %v1681_v33 = vrot.slane %v3011_v35, %v2487_v49  ;;  %v1685_v60 = vrot.slane %v3016_v51, %v2487_v49  ;;  %vm3490_vm14 = vmmov %vm3485_vm6 }
 0x2c9   : > { %v1695_v26 = vrot.slane %v1332_v37, %v2490_v50  ;;  %v1713_v14 = vrot.slane %v1332_v37, %v2499_v56  ;;  %v3068_v6 = vmul.f32 %v1659_v1, %v2673_v54  ;;  %v3071_v20 = vmul.f32 %v1677_v27, %v2681_v10 }
 0x2ca   : > { %v1699_v17 = vrot.slane %v3011_v35, %v2490_v50  ;;  %v1703_v53 = vrot.slane %v3016_v51, %v2490_v50  ;;  %v3080_v5 = vmul.f32 %v1663_v22, %v2673_v54  ;;  %v3083_v13 = vmul.f32 %v1667_v62, %v2673_v54 }
 0x2cb   : > { %1339 = vrot.lane.b32.xlu1 %v3016_v51, %s2256_s24  ;;  %1413 = vrot.lane.b32.xlu0 %v1332_v37, %s2257_s29  ;;  %v3092_v52 = vmul.f32 %v1685_v60, %v2681_v10  ;;  %v3095_v25 = vmul.f32 %v1695_v26, %v2691_v18  ;;  %v3098_v22 = vmul.f32 %v1713_v14, %v2700_v28 }
 0x2cc   : > { %v1717_v54 = vrot.slane %v3011_v35, %v2499_v56  ;;  %v3110_v60 = vmul.f32 %v1703_v53, %v2691_v18 }
 0x2ce   : > { %v3132_v58 = vmul.f32 %v1717_v54, %v2700_v28 }
 0x2cf   : > { %1415 = vrot.lane.b32.xlu1 %v3011_v35, %s2257_s29  ;;  %1417 = vrot.lane.b32.xlu0 %v3016_v51, %s2257_s29 }
 0x2d3   : > { %1494 = vrot.lane.b32.xlu1 %v1332_v37, %s2258_s11  ;;  %1496 = vrot.lane.b32.xlu0 %v3011_v35, %s2258_s11 }
 0x2d7   : > { %1498 = vrot.lane.b32.xlu1 %v3016_v51, %s2258_s11  ;;  %1575 = vrot.lane.b32.xlu0 %v1332_v37, %s2259_s25  ;;  %s170_s11 = scalar_lea.vmem %s3396_s3, %s2219_s20 }
 0x2db   : > { %1577 = vrot.lane.b32.xlu1 %v3011_v35, %s2259_s25  ;;  %1579 = vrot.lane.b32.xlu0 %v3016_v51, %s2259_s25 }
 0x2df   : > { %1728 = vrot.lane.b32.xlu1 %v1332_v37, %s2260_s19  ;;  %1730 = vrot.lane.b32.xlu0 %v3011_v35, %s2260_s19 }
 0x2e3   : > { %1732 = vrot.lane.b32.xlu1 %v3016_v51, %s2260_s19  ;;  %1809 = vrot.lane.b32.xlu0 %v1332_v37, %s2261_s6 }
 0x2e7   : > { %1811 = vrot.lane.b32.xlu1 %v3011_v35, %s2261_s6  ;;  %1813 = vrot.lane.b32.xlu0 %v3016_v51, %s2261_s6 }
 0x2eb   : > { %1890 = vrot.lane.b32.xlu1 %v1332_v37, %s2262_s18  ;;  %1892 = vrot.lane.b32.xlu0 %v3011_v35, %s2262_s18 }
 0x2ef   : > { %1894 = vrot.lane.b32.xlu1 %v3016_v51, %s2262_s18  ;;  %1971 = vrot.lane.b32.xlu0 %v1332_v37, %s2263_s7  ;;  %v3086_v37 = vmul.f32 %v1681_v33, %v2681_v10  ;;  %v3107_v10 = vmul.f32 %v1699_v17, %v2691_v18 }
 0x2f3   : > { %1973 = vrot.lane.b32.xlu1 %v3011_v35, %s2263_s7  ;;  %1975 = vrot.lane.b32.xlu0 %v3016_v51, %s2263_s7 }
 0x339   : > { %v1336_v23 = vpop.permute.xlu1 %1335  ;;  %v1338_v15 = vpop.permute.xlu0 %1337 }
 0x33a   : > { %v1342_v41 = vsel %vm316_vm0, %v1336_v23, %v1338_v15 }
 0x33b   : > { %v1351_v1 = vrot.slane %v1342_v41, %v2484_v48  ;;  %v1366_v27 = vrot.slane %v1342_v41, %v2487_v49  ;;  %v1384_v8 = vrot.slane %v1342_v41, %v2490_v50  ;;  %v1402_v14 = vrot.slane %v1342_v41, %v2499_v56 }
 0x33d   : > { %v1340_v34 = vpop.permute.xlu1 %1339  ;;  %v1357_v33 = vmul.f32 %v1351_v1, %v2474_v43  ;;  %v1372_v29 = vmul.f32 %v1366_v27, %v2480_v46  ;;  %v1414_v36 = vpop.permute.xlu0 %1413  ;;  %v1390_v26 = vmul.f32 %v1384_v8, %v2472_v42 }
 0x33e   : > { %v1341_v35 = vsel %vm316_vm0, %v1338_v15, %v1340_v34  ;;  %v1343_v62 = vsel %vm316_vm0, %v1340_v34, %v1336_v23  ;;  %vm3468_vm0 = vcmp.lt.s32.totalorder %v2476_v44, 1 }
 0x33f   : > { %v1375_v1 = vadd.f32 %v1372_v29, %v1357_v33  ;;  %v1347_v27 = vrot.slane %v1343_v62, %v2484_v48  ;;  %v1355_v24 = vrot.slane %v1341_v35, %v2484_v48  ;;  %v1362_v17 = vrot.slane %v1343_v62, %v2487_v49 }
 0x340   : > { %v1370_v18 = vrot.slane %v1341_v35, %v2487_v49  ;;  %v1380_v53 = vrot.slane %v1343_v62, %v2490_v50  ;;  %v1388_v8 = vrot.slane %v1341_v35, %v2490_v50  ;;  %v1398_v41 = vrot.slane %v1343_v62, %v2499_v56 }
 0x341   : > { %v1416_v59 = vpop.permute.xlu1 %1415  ;;  %v1393_v15 = vadd.f32 %v1390_v26, %v1375_v1  ;;  %v1356_v4 = vmul.f32 %v1347_v27, %v2474_v43  ;;  %v1358_v29 = vmul.f32 %v1355_v24, %v2474_v43  ;;  %v1371_v34 = vmul.f32 %v1362_v17, %v2480_v46  ;;  %v1418_v23 = vpop.permute.xlu0 %1417 }
 0x342   : > { %v1408_v33 = vmul.f32 %v1402_v14, %v2511_v3  ;;  %v1373_v45 = vmul.f32 %v1370_v18, %v2480_v46  ;;  %v1406_v39 = vrot.slane %v1341_v35, %v2499_v56  ;;  %v1389_v62 = vmul.f32 %v1380_v53, %v2472_v42 }
 0x343   : > { %v1374_v11 = vadd.f32 %v1371_v34, %v1356_v4  ;;  %v1391_v26 = vmul.f32 %v1388_v8, %v2472_v42  ;;  %v1421_v43 = vsel %vm415_vm1, %v1418_v23, %v1414_v36  ;;  %v1407_v35 = vmul.f32 %v1398_v41, %v2511_v3 }
 0x344   : > { %v1411_v24 = vadd.f32 %v1408_v33, %v1393_v15  ;;  %v1376_v1 = vadd.f32 %v1373_v45, %v1358_v29  ;;  %v1425_v27 = vrot.slane %v1421_v43, %v2484_v48  ;;  %v1443_v14 = vrot.slane %v1421_v43, %v2487_v49 }
 0x345   : > { %v1392_v46 = vadd.f32 %v1389_v62, %v1374_v11  ;;  %v1461_v54 = vrot.slane %v1421_v43, %v2490_v50  ;;  %v1419_v4 = vsel %vm415_vm1, %v1416_v59, %v1418_v23  ;;  %v1409_v42 = vmul.f32 %v1406_v39, %v2511_v3  ;;  %v1495_v53 = vpop.permute.xlu1 %1494  ;;  %v1497_v29 = vpop.permute.xlu0 %1496 }
 0x346   : > { %v1394_v17 = vadd.f32 %v1391_v26, %v1376_v1  ;;  %v1479_v18 = vrot.slane %v1421_v43, %v2499_v56  ;;  %v1420_v45 = vsel %vm415_vm1, %v1414_v36, %v1416_v59  ;;  %v1434_v15 = vmul.f32 %v1425_v27, %v2518_v12  ;;  %vm3469_vm1 = vmmov %vm3468_vm0 }
 0x347   : > { %v1410_v8 = vadd.f32 %v1407_v35, %v1392_v46  ;;  %v1452_v11 = vmul.f32 %v1443_v14, %v2541_v40  ;;  %v1429_v41 = vrot.slane %v1420_v45, %v2484_v48  ;;  %v1433_v23 = vrot.slane %v1419_v4, %v2484_v48 }
 0x348   : > { %v1412_v34 = vadd.f32 %v1409_v42, %v1394_v17  ;;  %v1447_v33 = vrot.slane %v1420_v45, %v2487_v49  ;;  %v1451_v3 = vrot.slane %v1419_v4, %v2487_v49  ;;  %v1470_v62 = vmul.f32 %v1461_v54, %v2547_v57 }
 0x349   : > { %v1437_v39 = vadd.f32 %v1434_v15, %v1410_v8  ;;  %v1435_v59 = vmul.f32 %v1429_v41, %v2518_v12  ;;  %v1465_v36 = vrot.slane %v1420_v45, %v2490_v50  ;;  %v1488_v26 = vmul.f32 %v1479_v18, %v2553_v0  ;;  %v1499_v15 = vpop.permute.xlu1 %1498 }
 0x34a   : > { %v1436_v43 = vmul.f32 %v1433_v23, %v2518_v12  ;;  %v1469_v1 = vrot.slane %v1419_v4, %v2490_v50  ;;  %v1483_v27 = vrot.slane %v1420_v45, %v2499_v56  ;;  %v1453_v35 = vmul.f32 %v1447_v33, %v2541_v40 }
 0x34b   : > { %v1455_v14 = vadd.f32 %v1452_v11, %v1437_v39  ;;  %v1438_v46 = vadd.f32 %v1435_v59, %v1411_v24  ;;  %v1454_v17 = vmul.f32 %v1451_v3, %v2541_v40  ;;  %v1471_v54 = vmul.f32 %v1465_v36, %v2547_v57  ;;  %v1576_v24 = vpop.permute.xlu0 %1575 }
 0x34c   : > { %v1439_v42 = vadd.f32 %v1436_v43, %v1412_v34  ;;  %v1487_v8 = vrot.slane %v1419_v4, %v2499_v56  ;;  %v1501_v18 = vsel %vm517_vm2, %v1495_v53, %v1497_v29  ;;  %v1472_v33 = vmul.f32 %v1469_v1, %v2547_v57 }
 0x34d   : > { %v1473_v12 = vadd.f32 %v1470_v62, %v1455_v14  ;;  %v1456_v41 = vadd.f32 %v1453_v35, %v1438_v46  ;;  %v1510_v23 = vrot.slane %v1501_v18, %v2484_v48  ;;  %v1528_v45 = vrot.slane %v1501_v18, %v2487_v49 }
 0x34e   : > { %v1457_v11 = vadd.f32 %v1454_v17, %v1439_v42  ;;  %v1489_v40 = vmul.f32 %v1483_v27, %v2553_v0  ;;  %v1490_v34 = vmul.f32 %v1487_v8, %v2553_v0  ;;  %v1546_v39 = vrot.slane %v1501_v18, %v2490_v50  ;;  %v1578_v42 = vpop.permute.xlu1 %1577 }
 0x34f   : > { %v1491_v3 = vadd.f32 %v1488_v26, %v1473_v12  ;;  %v1474_v4 = vadd.f32 %v1471_v54, %v1456_v41  ;;  %v1564_v59 = vrot.slane %v1501_v18, %v2499_v56  ;;  %v1516_v36 = vmul.f32 %v1510_v23, %v2558_v9 }
 0x350   : > { %v1475_v62 = vadd.f32 %v1472_v33, %v1457_v11  ;;  %v1534_v43 = vmul.f32 %v1528_v45, %v2582_v38  ;;  %v1500_v14 = vsel %vm517_vm2, %v1497_v29, %v1499_v15  ;;  %v1502_v57 = vsel %vm517_vm2, %v1499_v15, %v1495_v53  ;;  %v1580_v53 = vpop.permute.xlu0 %1579  ;;  %vm3470_vm2 = vmmov %vm3468_vm0 }
 0x351   : > { %v1492_v46 = vadd.f32 %v1489_v40, %v1474_v4  ;;  %v1514_v0 = vrot.slane %v1500_v14, %v2484_v48  ;;  %v1532_v26 = vrot.slane %v1500_v14, %v2487_v49  ;;  %v1506_v27 = vrot.slane %v1502_v57, %v2484_v48 }
 0x352   : > { %v1493_v1 = vadd.f32 %v1490_v34, %v1475_v62  ;;  %v1524_v35 = vrot.slane %v1502_v57, %v2487_v49  ;;  %v1542_v17 = vrot.slane %v1502_v57, %v2490_v50  ;;  %v1552_v8 = vmul.f32 %v1546_v39, %v2588_v55 }
 0x353   : > { %v1519_v54 = vadd.f32 %v1516_v36, %v1492_v46  ;;  %v1517_v29 = vmul.f32 %v1514_v0, %v2558_v9  ;;  %v1550_v18 = vrot.slane %v1500_v14, %v2490_v50  ;;  %v1570_v15 = vmul.f32 %v1564_v59, %v2599_v7 }
 0x354   : > { %v1515_v12 = vmul.f32 %v1506_v27, %v2558_v9  ;;  %v1535_v41 = vmul.f32 %v1532_v26, %v2582_v38  ;;  %v1560_v23 = vrot.slane %v1502_v57, %v2499_v56  ;;  %v1533_v33 = vmul.f32 %v1524_v35, %v2582_v38 }
 0x355   : > { %v1537_v45 = vadd.f32 %v1534_v43, %v1519_v54  ;;  %v1520_v11 = vadd.f32 %v1517_v29, %v1493_v1  ;;  %v1568_v40 = vrot.slane %v1500_v14, %v2499_v56  ;;  %v1551_v4 = vmul.f32 %v1542_v17, %v2588_v55  ;;  %v1729_v14 = vpop.permute.xlu1 %1728 }
 0x356   : > { %v1518_v34 = vadd.f32 %v1515_v12, %v1491_v3  ;;  %v1553_v39 = vmul.f32 %v1550_v18, %v2588_v55  ;;  %v1583_v59 = vsel %vm3468_vm0, %v1580_v53, %v1576_v24  ;;  %v1569_v36 = vmul.f32 %v1560_v23, %v2599_v7 }
 0x357   : > { %v1555_v62 = vadd.f32 %v1552_v8, %v1537_v45  ;;  %v1538_v9 = vadd.f32 %v1535_v41, %v1520_v11  ;;  %v1587_v46 = vrot.slane %v1583_v59, %v2484_v48  ;;  %v1571_v57 = vmul.f32 %v1568_v40, %v2599_v7 }
 0x358   : > { %v1536_v43 = vadd.f32 %v1533_v33, %v1518_v34  ;;  %v1605_v38 = vrot.slane %v1583_v59, %v2487_v49  ;;  %v1581_v3 = vsel %vm3469_vm1, %v1578_v42, %v1580_v53  ;;  %v1623_v55 = vrot.slane %v1583_v59, %v2490_v50  ;;  %v1731_v53 = vpop.permute.xlu0 %1730 }
 0x359   : > { %v1556_v0 = vadd.f32 %v1553_v39, %v1538_v9  ;;  %v1641_v26 = vrot.slane %v1583_v59, %v2499_v56  ;;  %v1582_v1 = vsel %vm3470_vm2, %v1576_v24, %v1578_v42  ;;  %v1573_v27 = vadd.f32 %v1570_v15, %v1555_v62  ;;  %v1733_v39 = vpop.permute.xlu1 %1732 }
 0x35a   : > { %v1554_v35 = vadd.f32 %v1551_v4, %v1536_v43  ;;  %v1596_v17 = vmul.f32 %v1587_v46, %v2606_v16  ;;  %v1614_v7 = vmul.f32 %v1605_v38, %v2650_v2  ;;  %v1591_v8 = vrot.slane %v1582_v1, %v2484_v48 }
 0x35b   : > { %v1574_v54 = vadd.f32 %v1571_v57, %v1556_v0  ;;  %v1595_v29 = vrot.slane %v1581_v3, %v2484_v48  ;;  %v1609_v18 = vrot.slane %v1582_v1, %v2487_v49  ;;  %v1613_v41 = vrot.slane %v1581_v3, %v2487_v49 }
 0x35c   : > { %v1572_v12 = vadd.f32 %v1569_v36, %v1554_v35  ;;  %v1627_v23 = vrot.slane %v1582_v1, %v2490_v50  ;;  %v1631_v24 = vrot.slane %v1581_v3, %v2490_v50  ;;  %v1632_v42 = vmul.f32 %v1623_v55, %v2658_v19 }
 0x35d   : > { %v1597_v15 = vmul.f32 %v1591_v8, %v2606_v16  ;;  %v1598_v45 = vmul.f32 %v1595_v29, %v2606_v16  ;;  %v1645_v11 = vrot.slane %v1582_v1, %v2499_v56  ;;  %v1650_v40 = vmul.f32 %v1641_v26, %v2666_v31 }
 0x35e   : > { %v1599_v33 = vadd.f32 %v1596_v17, %v1572_v12  ;;  %v1615_v34 = vmul.f32 %v1609_v18, %v2650_v2  ;;  %v1616_v4 = vmul.f32 %v1613_v41, %v2650_v2  ;;  %v1633_v9 = vmul.f32 %v1627_v23, %v2658_v19  ;;  %v1810_v2 = vpop.permute.xlu0 %1809 }
 0x35f   : > { %v1600_v59 = vadd.f32 %v1597_v15, %v1573_v27  ;;  %v1601_v62 = vadd.f32 %v1598_v45, %v1574_v54  ;;  %v1649_v36 = vrot.slane %v1581_v3, %v2499_v56  ;;  %v1634_v43 = vmul.f32 %v1631_v24, %v2658_v19 }
 0x360   : > { %v1617_v46 = vadd.f32 %v1614_v7, %v1599_v33  ;;  %v1651_v16 = vmul.f32 %v1645_v11, %v2666_v31  ;;  %v1735_v57 = vsel %vm3471_vm15, %v1729_v14, %v1731_v53  ;;  %v1734_v26 = vsel %vm3472_vm8, %v1731_v53, %v1733_v39 }
 0x361   : > { %v1618_v38 = vadd.f32 %v1615_v34, %v1600_v59  ;;  %v1619_v0 = vadd.f32 %v1616_v4, %v1601_v62  ;;  %v1740_v55 = vrot.slane %v1735_v57, %v2484_v48  ;;  %v1758_v27 = vrot.slane %v1735_v57, %v2487_v49 }
 0x362   : > { %v1635_v1 = vadd.f32 %v1632_v42, %v1617_v46  ;;  %v1776_v3 = vrot.slane %v1735_v57, %v2490_v50  ;;  %v1736_v19 = vsel %vm3473_vm9, %v1733_v39, %v1729_v14  ;;  %v1652_v7 = vmul.f32 %v1649_v36, %v2666_v31 }
 0x363   : > { %v1636_v35 = vadd.f32 %v1633_v9, %v1618_v38  ;;  %v1637_v17 = vadd.f32 %v1634_v43, %v1619_v0  ;;  %v1794_v54 = vrot.slane %v1735_v57, %v2499_v56  ;;  %v1749_v29 = vmul.f32 %v1740_v55, %v2706_v32  ;;  %v1812_v9 = vpop.permute.xlu1 %1811 }
 0x364   : > { %v1653_v8 = vadd.f32 %v1650_v40, %v1635_v1  ;;  %v3474_v18 = vrot.slane %v3016_v51, %v2499_v56  ;;  %v1744_v12 = vrot.slane %v1734_v26, %v2484_v48  ;;  %v1767_v14 = vmul.f32 %v1758_v27, %v2729_v21  ;;  %v1814_v40 = vpop.permute.xlu0 %1813 }
 0x365   : > { %v1654_v41 = vadd.f32 %v1651_v16, %v1636_v35  ;;  %v1655_v23 = vadd.f32 %v1652_v7, %v1637_v17  ;;  %v1748_v24 = vrot.slane %v1736_v19, %v2484_v48  ;;  %v1785_v42 = vmul.f32 %v1776_v3, %v2735_v30  ;;  %v3478_v7 = vld [vmem:[#allocation3_spill] sm:$0xff] }
 0x366   : > { %v1724_v53 = vmul.f32 %v3474_v18, %v2700_v28  ;;  %v1671_v31 = vadd.f32 %v3068_v6, %v1653_v8  ;;  %v1762_v15 = vrot.slane %v1734_v26, %v2487_v49  ;;  %v1766_v45 = vrot.slane %v1736_v19, %v2487_v49  ;;  %v3479_v8 = vld [vmem:[#allocation4_spill] sm:$0xff] }
 0x367   : > { %v1672_v11 = vadd.f32 %v3080_v5, %v1654_v41  ;;  %v1673_v28 = vadd.f32 %v3083_v13, %v1655_v23  ;;  %v1803_v51 = vmul.f32 %v1794_v54, %v2739_v47  ;;  %v1780_v33 = vrot.slane %v1734_v26, %v2490_v50  ;;  %v1891_v35 = vpop.permute.xlu1 %1890  ;;  %v3480_v41 = vld [vmem:[#allocation5_spill] sm:$0xff] }
 0x368   : > { %v1689_v34 = vadd.f32 %v3071_v20, %v1671_v31  ;;  %v1750_v4 = vmul.f32 %v1744_v12, %v2706_v32  ;;  %v1751_v6 = vmul.f32 %v1748_v24, %v2706_v32  ;;  %v1784_v39 = vrot.slane %v1736_v19, %v2490_v50 }
 0x369   : > { %v1690_v59 = vadd.f32 %v3086_v37, %v1672_v11  ;;  %v1691_v62 = vadd.f32 %v3092_v52, %v1673_v28  ;;  %v1768_v5 = vmul.f32 %v1762_v15, %v2729_v21  ;;  %v1769_v13 = vmul.f32 %v1766_v45, %v2729_v21 }
 0x36a   : > { %v1707_v36 = vadd.f32 %v3095_v25, %v1689_v34  ;;  %v1798_v46 = vrot.slane %v1734_v26, %v2499_v56  ;;  %v1802_v20 = vrot.slane %v1736_v19, %v2499_v56  ;;  %v1817_v32 = vsel %vm3475_vm10, %v1814_v40, %v1810_v2 }
 0x36b   : > { %v1708_v43 = vadd.f32 %v3107_v10, %v1690_v59  ;;  %v1709_v37 = vadd.f32 %v3110_v60, %v1691_v62  ;;  %v1786_v52 = vmul.f32 %v1780_v33, %v2735_v30  ;;  %v1829_v16 = vrot.slane %v1817_v32, %v2484_v48 }
 0x36c   : > { %v1725_v21 = vadd.f32 %v3098_v22, %v1707_v36  ;;  %v1787_v57 = vmul.f32 %v1784_v39, %v2735_v30  ;;  %v1847_v25 = vrot.slane %v1817_v32, %v2487_v49  ;;  %v1865_v38 = vrot.slane %v1817_v32, %v2490_v50 }
 0x36d   : > { %v1726_v0 = vadd.f32 %v3132_v58, %v1708_v43  ;;  %v1727_v55 = vadd.f32 %v1724_v53, %v1709_v37  ;;  %v1883_v26 = vrot.slane %v1817_v32, %v2499_v56  ;;  %v1815_v10 = vsel %vm3476_vm11, %v1812_v9, %v1814_v40  ;;  %v1893_v53 = vpop.permute.xlu0 %1892 }
 0x36e   : > { %v1752_v60 = vadd.f32 %v1749_v29, %v1725_v21  ;;  %v1804_v1 = vmul.f32 %v1798_v46, %v2739_v47  ;;  %v1805_v27 = vmul.f32 %v1802_v20, %v2739_v47  ;;  %v1816_v30 = vsel %vm3477_vm3, %v1810_v2, %v1812_v9 }
 0x36f   : > { %v1753_v22 = vadd.f32 %v1750_v4, %v1726_v0  ;;  %v1754_v3 = vadd.f32 %v1751_v6, %v1727_v55  ;;  %v1832_v19 = vmul.f32 %v1829_v16, %v2749_v61  ;;  %v1821_v58 = vrot.slane %v1816_v30, %v2484_v48  ;;  %v3482_v16 = vld [vmem:[#allocation6_spill] sm:$0xff] }
 0x370   : > { %v1770_v17 = vadd.f32 %v1767_v14, %v1752_v60  ;;  %v1850_v54 = vmul.f32 %v1847_v25, %v3478_v7  ;;  %v1868_v18 = vmul.f32 %v1865_v38, %v3479_v8  ;;  %v1825_v29 = vrot.slane %v1815_v10, %v2484_v48 }
 0x371   : > { %v1771_v12 = vadd.f32 %v1768_v5, %v1753_v22  ;;  %v1772_v47 = vadd.f32 %v1769_v13, %v1754_v3  ;;  %v1886_v23 = vmul.f32 %v1883_v26, %v3480_v41  ;;  %v1839_v2 = vrot.slane %v1816_v30, %v2487_v49  ;;  %v1895_v5 = vpop.permute.xlu1 %1894  ;;  %v1972_v36 = vpop.permute.xlu0 %1971 }
 0x372   : > { %v1788_v24 = vadd.f32 %v1785_v42, %v1770_v17  ;;  %v1830_v31 = vmul.f32 %v1821_v58, %v2749_v61  ;;  %v1843_v15 = vrot.slane %v1815_v10, %v2487_v49  ;;  %v1857_v14 = vrot.slane %v1816_v30, %v2490_v50 }
 0x373   : > { %v1789_v45 = vadd.f32 %v1786_v52, %v1771_v12  ;;  %v1790_v11 = vadd.f32 %v1787_v57, %v1772_v47  ;;  %v1831_v28 = vmul.f32 %v1825_v29, %v2749_v61  ;;  %v1861_v33 = vrot.slane %v1815_v10, %v2490_v50 }
 0x374   : > { %v1806_v40 = vadd.f32 %v1803_v51, %v1788_v24  ;;  %v1875_v34 = vrot.slane %v1816_v30, %v2499_v56  ;;  %v1879_v4 = vrot.slane %v1815_v10, %v2499_v56  ;;  %v1897_v42 = vsel %vm3481_vm7, %v1891_v35, %v1893_v53 }
 0x375   : > { %v1807_v6 = vadd.f32 %v1804_v1, %v1789_v45  ;;  %v1808_v39 = vadd.f32 %v1805_v27, %v1790_v11  ;;  %v1848_v59 = vmul.f32 %v1839_v2, %v3478_v7  ;;  %v1902_v62 = vrot.slane %v1897_v42, %v2484_v48  ;;  %v3487_v11 = vld [vmem:[#allocation8_spill] sm:$0xff] }
 0x376   : > { %v1833_v13 = vadd.f32 %v1830_v31, %v1806_v40  ;;  %v1849_v61 = vmul.f32 %v1843_v15, %v3478_v7  ;;  %v1866_v9 = vmul.f32 %v1857_v14, %v3479_v8  ;;  %v1920_v51 = vrot.slane %v1897_v42, %v2487_v49  ;;  %v1976_v7 = vpop.permute.xlu0 %1975  ;;  %v3486_v14 = vld [vmem:[#allocation7_spill] sm:$0xff]  ;;  %v1974_v40 = vpop.permute.xlu1 %1973 }
 0x377   : > { %v1835_v46 = vadd.f32 %v1832_v19, %v1808_v39  ;;  %v1834_v20 = vadd.f32 %v1831_v28, %v1807_v6  ;;  %v1867_v32 = vmul.f32 %v1861_v33, %v3479_v8  ;;  %v1884_v43 = vmul.f32 %v1875_v34, %v3480_v41 }
 0x378   : > { %v1851_v37 = vadd.f32 %v1848_v59, %v1833_v13  ;;  %v1885_v52 = vmul.f32 %v1879_v4, %v3480_v41  ;;  %v1911_v21 = vmul.f32 %v1902_v62, %v3482_v16  ;;  %v1896_v57 = vsel %vm3483_vm12, %v1893_v53, %v1895_v5 }
 0x379   : > { %v1853_v25 = vadd.f32 %v1850_v54, %v1835_v46  ;;  %v1852_v38 = vadd.f32 %v1849_v61, %v1834_v20  ;;  %v1938_v0 = vrot.slane %v1897_v42, %v2490_v50  ;;  %v1898_v55 = vsel %vm3484_vm5, %v1895_v5, %v1891_v35  ;;  %v3488_v61 = vld [vmem:[#allocation9_spill] sm:$0xff] }
 0x37a   : > { %v1869_v26 = vadd.f32 %v1866_v9, %v1851_v37  ;;  %v1929_v10 = vmul.f32 %v1920_v51, %v2830_v63  ;;  %v1906_v60 = vrot.slane %v1896_v57, %v2484_v48  ;;  %v1910_v1 = vrot.slane %v1898_v55, %v2484_v48 }
 0x37b   : > { %v1871_v27 = vadd.f32 %v1868_v18, %v1853_v25  ;;  %v1870_v30 = vadd.f32 %v1867_v32, %v1852_v38  ;;  %v1924_v22 = vrot.slane %v1896_v57, %v2487_v49  ;;  %v1928_v3 = vrot.slane %v1898_v55, %v2487_v49 }
 0x37c   : > { %v1887_v19 = vadd.f32 %v1884_v43, %v1869_v26  ;;  %v1956_v58 = vrot.slane %v1897_v42, %v2499_v56  ;;  %v1912_v17 = vmul.f32 %v1906_v60, %v3482_v16  ;;  %v1913_v35 = vmul.f32 %v1910_v1, %v3482_v16  ;;  %v3492_v60 = vld [vmem:[#allocation11_spill] sm:$0xff] }
 0x37d   : > { %v1889_v54 = vadd.f32 %v1886_v23, %v1871_v27  ;;  %v1888_v8 = vadd.f32 %v1885_v52, %v1870_v30  ;;  %v1930_v29 = vmul.f32 %v1924_v22, %v2830_v63  ;;  %v1942_v53 = vrot.slane %v1896_v57, %v2490_v50 }
 0x37e   : > { %v1914_v18 = vadd.f32 %v1911_v21, %v1887_v19  ;;  %v1931_v12 = vmul.f32 %v1928_v3, %v2830_v63  ;;  %v1946_v47 = vrot.slane %v1898_v55, %v2490_v50  ;;  %v1960_v41 = vrot.slane %v1896_v57, %v2499_v56  ;;  %v3491_v57 = vld [vmem:[#allocation10_spill] sm:$0xff] }
 0x37f   : > { %v1915_v2 = vadd.f32 %v1912_v17, %v1888_v8  ;;  %v1916_v24 = vadd.f32 %v1913_v35, %v1889_v54  ;;  %v1964_v31 = vrot.slane %v1898_v55, %v2499_v56  ;;  %v1979_v15 = vsel %vm3485_vm6, %v1976_v7, %v1972_v36 }
 0x380   : > { %v1932_v23 = vadd.f32 %v1929_v10, %v1914_v18  ;;  %v1947_v45 = vmul.f32 %v1938_v0, %v3486_v14  ;;  %v1965_v28 = vmul.f32 %v1956_v58, %v3487_v11  ;;  %v1991_v33 = vrot.slane %v1979_v15, %v2484_v48  ;;  %v3493_v58 = vld [vmem:[#allocation12_spill] sm:$0xff] }
 0x381   : > { %v1933_v63 = vadd.f32 %v1930_v29, %v1915_v2  ;;  %v1934_v34 = vadd.f32 %v1931_v12, %v1916_v24  ;;  %v1948_v4 = vmul.f32 %v1942_v53, %v3486_v14  ;;  %v1949_v42 = vmul.f32 %v1946_v47, %v3486_v14  ;;  %v3494_v24 = vld [vmem:[#allocation13_spill] sm:$0xff] }
 0x382   : > { %v1950_v6 = vadd.f32 %v1947_v45, %v1932_v23  ;;  %v1966_v39 = vmul.f32 %v1960_v41, %v3487_v11  ;;  %v1967_v59 = vmul.f32 %v1964_v31, %v3487_v11  ;;  %v2009_v62 = vrot.slane %v1979_v15, %v2487_v49  ;;  %v3495_v23 = vld [vmem:[#allocation14_spill] sm:$0xff]  ;;  %v3496_v45 = vld [vmem:[#allocation15_spill] sm:$0xff] }
 0x383   : > { %v1951_v5 = vadd.f32 %v1948_v4, %v1933_v63  ;;  %v1952_v13 = vadd.f32 %v1949_v42, %v1934_v34  ;;  %v1994_v9 = vmul.f32 %v1991_v33, %v3488_v61  ;;  %v1977_v51 = vsel %vm3489_vm13, %v1974_v40, %v1976_v7 }
 0x384   : > { %v1968_v46 = vadd.f32 %v1965_v28, %v1950_v6  ;;  %v2027_v20 = vrot.slane %v1979_v15, %v2490_v50  ;;  %v2045_v32 = vrot.slane %v1979_v15, %v2499_v56  ;;  %v1978_v43 = vsel %vm3490_vm14, %v1972_v36, %v1974_v40  ;;  %v3497_v28 = vld [vmem:[#allocation16_spill] sm:$0xff] }
 0x385   : > { %v1969_v37 = vadd.f32 %v1966_v39, %v1951_v5  ;;  %v1970_v52 = vadd.f32 %v1967_v59, %v1952_v13  ;;  %v1983_v16 = vrot.slane %v1978_v43, %v2484_v48  ;;  %v1987_v21 = vrot.slane %v1977_v51, %v2484_v48 }
 0x386   : > { %v2012_v25 = vmul.f32 %v2009_v62, %v3491_v57  ;;  %v2001_v38 = vrot.slane %v1978_v43, %v2487_v49  ;;  %v2005_v0 = vrot.slane %v1977_v51, %v2487_v49  ;;  %v2019_v55 = vrot.slane %v1978_v43, %v2490_v50 }
 0x387   : > { %v1997_v26 = vadd.f32 %v1994_v9, %v1970_v52  ;;  %v1992_v10 = vmul.f32 %v1983_v16, %v3488_v61  ;;  %v1993_v44 = vmul.f32 %v1987_v21, %v3488_v61  ;;  %v2023_v36 = vrot.slane %v1977_v51, %v2490_v50 }
 0x388   : > { %v2030_v1 = vmul.f32 %v2027_v20, %v3492_v60  ;;  %v2010_v27 = vmul.f32 %v2001_v38, %v3491_v57  ;;  %v2011_v48 = vmul.f32 %v2005_v0, %v3491_v57  ;;  %v2037_v30 = vrot.slane %v1978_v43, %v2499_v56  ;;  %v3498_v0 = vld [vmem:[#allocation17_spill] sm:$0xff] }
 0x389   : > { %v2015_v22 = vadd.f32 %v2012_v25, %v1997_v26  ;;  %v1995_v3 = vadd.f32 %v1992_v10, %v1968_v46  ;;  %v1996_v49 = vadd.f32 %v1993_v44, %v1969_v37  ;;  %v2041_v19 = vrot.slane %v1977_v51, %v2499_v56 }
 0x38a   : > { %v2048_v17 = vmul.f32 %v2045_v32, %v3493_v58  ;;  %v2028_v35 = vmul.f32 %v2019_v55, %v3492_v60  ;;  %v2029_v8 = vmul.f32 %v2023_v36, %v3492_v60  ;;  %v2046_v29 = vmul.f32 %v2037_v30, %v3493_v58  ;;  %v3499_v60 = vld [vmem:[#allocation18_spill] sm:$0xff]  ;;  %v3501_v30 = vld [vmem:[#allocation20_spill] sm:$0xff] }
 0x38b   : > { %v2033_v7 = vadd.f32 %v2030_v1, %v2015_v22  ;;  %v2013_v54 = vadd.f32 %v2010_v27, %v1995_v3  ;;  %v2014_v50 = vadd.f32 %v2011_v48, %v1996_v49  ;;  %v2047_v12 = vmul.f32 %v2041_v19, %v3493_v58  ;;  %v3500_v27 = vld [vmem:[#allocation19_spill] sm:$0xff]  ;;  %v2245_v3 = vld [vmem:[%s2310_s23] sm:$0xff] }
 0x38c   : > { %v3502_v19 = vld [vmem:[#allocation2_spill] sm:$0xff] }
 0x38d   : > { %v2031_v53 = vadd.f32 %v2028_v35, %v2013_v54  ;;  %v2032_v18 = vadd.f32 %v2029_v8, %v2014_v50  ;;  %v2051_v47 = vadd.f32 %v2048_v17, %v2033_v7  ;;  %v2246_v17 = vld [vmem:[%s2310_s23 + $0x8] sm:$0xf] }
 0x38f   : > { %v2049_v41 = vadd.f32 %v2046_v29, %v2031_v53  ;;  %v2050_v2 = vadd.f32 %v2047_v12, %v2032_v18  ;;  %v2054_v56 = vadd.f32 %v2051_v47, %v3494_v24 }
 0x391   : > { %v2052_v31 = vadd.f32 %v2049_v41, %v3494_v24  ;;  %v2053_v15 = vadd.f32 %v2050_v2, %v3494_v24  ;;  %v2057_v33 = vmul.f32 %v3497_v28, %v2054_v56 }
 0x393   : > { %v2055_v14 = vmul.f32 %v3495_v23, %v2052_v31  ;;  %v2056_v11 = vmul.f32 %v3496_v45, %v2053_v15  ;;  %v2061_v4 = vsel %vm1286_vm4, %v2057_v33, 0.0 }
 0x395   : > { %v2058_v40 = vsel %vm1286_vm4, %v2055_v14, 0.0  ;;  %v2059_v63 = vsel %vm1286_vm4, %v2056_v11, 0.0 }
 0x396   : > { %v2060_v34 = vadd.f32 %v2059_v63, %v2058_v40 }
 0x398   : > { %v2062_v42 = vadd.f32 %v2061_v4, %v2060_v34 }
 0x39a   : > { %2063 = vadd.xlane.f32.xlu1 %v2062_v42 }
 0x423   : > { %v2064_v6 = vpop.xlane.xlu1 %2063 }
 0x424   : > { %v2065_v39 = vmul.f32 0.00390625, %v2064_v6 }
 0x426   : > { %v2066_v59 = vsub.f32 %v2052_v31, %v2065_v39  ;;  %v2067_v62 = vsub.f32 %v2053_v15, %v2065_v39  ;;  %v2068_v5 = vsub.f32 %v2054_v56, %v2065_v39 }
 0x428   : > { %v2069_v13 = vmul.f32 %v3495_v23, %v2066_v59  ;;  %v2070_v61 = vmul.f32 %v3496_v45, %v2067_v62  ;;  %v2071_v9 = vmul.f32 %v3497_v28, %v2068_v5 }
 0x42a   : > { %v2072_v51 = vmul.f32 %v2069_v13, %v2069_v13  ;;  %v2073_v46 = vmul.f32 %v2070_v61, %v2070_v61  ;;  %v2074_v20 = vmul.f32 %v2071_v9, %v2071_v9 }
 0x42c   : > { %v2075_v32 = vsel %vm1286_vm4, %v2072_v51, 0.0  ;;  %v2076_v43 = vsel %vm1286_vm4, %v2073_v46, 0.0  ;;  %v2078_v52 = vsel %vm1286_vm4, %v2074_v20, 0.0 }
 0x42d   : > { %v2077_v37 = vadd.f32 %v2076_v43, %v2075_v32 }
 0x42f   : > { %v2079_v16 = vadd.f32 %v2078_v52, %v2077_v37 }
 0x431   : > { %2080 = vadd.xlane.f32.xlu0 %v2079_v16 }
 0x4ba   : > { %v2081_v21 = vpop.xlane.xlu0 %2080 }
 0x4bb   : > { %v2082_v57 = vmul.f32 0.00390625, %v2081_v21 }
 0x4bd   : > { %v2083_v25 = vadd.f32 1e-05, %v2082_v57 }
 0x4bf   : > { %2243 = vrsqrt.f32 %v2083_v25 }
 0x4cc   : > { %v2244_v38 = vpop.eup %2243 }
 0x4cd   : > { %v2085_v55 = vmul.f32 %v2244_v38, %v3498_v0 }
 0x4cf   : > { %2088 = vperm.xlu0 %2238, %v2085_v55  }
 0x54a   : > { %v2089_v26 = vpop.permute.xlu0 %2088 }
 0x54b   : > { %v2091_v10 = vmul.f32 %v2089_v26, %v2069_v13  ;;  %v2092_v44 = vmul.f32 %v2089_v26, %v2070_v61  ;;  %v2093_v36 = vmul.f32 %v2089_v26, %v2071_v9 }
 0x54d   : > { %v2094_v1 = vadd.f32 %v2091_v10, %v3499_v60  ;;  %v2095_v48 = vadd.f32 %v2092_v44, %v3500_v27  ;;  %v2096_v22 = vadd.f32 %v2093_v36, %v3501_v30 }
 0x54f   : > { %v2097_v49 = vadd.f32 %v2245_v3, %v2094_v1  ;;  %v2098_v58 = vadd.f32 %v2095_v48, %v3502_v19  ;;  %v2099_v35 = vadd.f32 %v2246_v17, %v2096_v22 }
 0x551   : > { %vm2100_vm4 = vcmp.ge.f32.partialorder %v2097_v49, 0.0  ;;  %vm2101_vm0 = vcmp.ge.f32.partialorder %v2098_v58, 0.0  ;;  %vm2102_vm1 = vcmp.ge.f32.partialorder %v2099_v35, 0.0  ;;  %v2103_v7 = vmul.f32 0.01, %v2097_v49 }
 0x552   : > { %v2104_v54 = vmul.f32 0.01, %v2098_v58  ;;  %v2105_v50 = vmul.f32 0.01, %v2099_v35 }
 0x553   : > { %v2106_v8 = vsel %vm2100_vm4, %v2097_v49, %v2103_v7 }
 0x554   : > { %v2107_v29 = vsel %vm2101_vm0, %v2098_v58, %v2104_v54  ;;  %v2108_v53 = vsel %vm2102_vm1, %v2099_v35, %v2105_v50 }
 0x555   : > { %v2111_v18 = vcombine.low %v2106_v8, %v2107_v29  ;;  %2114 = vst [vmem:[%s170_s11 + $0x8] sm:$0xf] %v2108_v53 }
 0x557   : > { %2113 = vst [vmem:[%s170_s11] sm:$0xff] %v2111_v18 }
 0x558 PF: > { %s13_s12 = sadd.s32 1, %s2253_s12  }
 0x559   : > { %p10_p4 = scmp.ge.s32.totalorder %s13_s12, 4  }
 0x55b   :  { %12 = sbr.rel (!%p10_p4) target bundleno = 1 (0x1), region = 99 }

</bundles_post_ra>
